<compile_context>
chip_gen: v6e
topology: v6e:2x2x1
jax: 0.10.0
libtpu: 0.0.40
codegen_flags: <defaults>
</compile_context>

<pallas_src>
import functools

import jax
import jax.numpy as jnp
from jax.experimental import pallas as pl
from jax.experimental.pallas import tpu as pltpu

EPS_BN = 1e-5      # nn.BatchNorm1d default eps
EPS_NORM = 1e-12   # F.normalize default eps
LANE = 128


def _ceil_to(n, m):
    return ((n + m - 1) // m) * m


# ------------------------- backbone kernel ---------------------------------
def _backbone_kernel(x_ref, m_ref, w_ref, b_ref, out_ref, *, tb, hw, width, c, kcp):
    # x_ref:  (1, C, L)   TB raw images folded into the lane axis, L = TB*HW
    # m_ref:  (9, L)      validity mask per 3x3 tap (implements SAME zero pad)
    # w_ref:  (KCP, F_PAD) conv weight, row index k*C + c with k = ky*3 + kx
    # b_ref:  (1, F_PAD)
    # out_ref:(TB, F_PAD) pooled representation (lane-dense, zero-padded feats)
    lanes = tb * hw
    x = x_ref[0]                                   # (C, L)
    m = m_ref[...]                                 # (9, L)

    # Build the 3x3 im2col patches entirely in VMEM (no HBM round trip):
    # shifted copy per tap (XLU roll) masked to zero outside the image.
    cols = []
    k = 0
    for oy in (-1, 0, 1):
        for ox in (-1, 0, 1):
            d = oy * width + ox
            sh = x if d == 0 else pltpu.roll(x, shift=(-d) % lanes, axis=1)
            cols.append(sh * m[k:k + 1, :])        # (C, L)
            k += 1
    if kcp > 9 * c:                                # pad contraction dim to 8-mult
        cols.append(jnp.zeros((kcp - 9 * c, lanes), jnp.float32))
    patches = jnp.concatenate(cols, axis=0)        # (KCP, L)

    # conv for all TB images as ONE MXU matmul (LHS-transposed contraction).
    h = jax.lax.dot_general(
        patches, w_ref[...], (((0,), (0,)), ((), ())),
        preferred_element_type=jnp.float32)        # (L, F_PAD)
    h = jnp.maximum(h + b_ref[...], 0.0)           # bias + ReLU

    # global average pool per image: XLU reduction, no M=1 matmul.
    rows = [jnp.mean(h[i * hw:(i + 1) * hw, :], axis=0, keepdims=True)
            for i in range(tb)]
    out_ref[...] = jnp.concatenate(rows, axis=0)   # (TB, F_PAD) lane-dense store


def backbone_representation(x, conv_w, conv_b):
    """3x3 conv (SAME) -> ReLU -> global avg pool -> flatten, for all 2B images.

    Returns a lane-dense (N, F_PAD) representation; features F..F_PAD-1 are 0.
    """
    N, C, H, W = x.shape
    F = conv_w.shape[0]
    HW = H * W
    KC = 9 * C
    KCP = _ceil_to(KC, 8)
    F_PAD = _ceil_to(F, LANE)

    # images per grid step (amortize per-step overhead; review: TB = 8..32)
    for cand in (32, 16, 8):
        if N % cand == 0:
            tb = cand
            break
    else:
        tb = N
    G = N // tb
    L = tb * HW

    # Fold TB images into the lane axis (cheap XLA relayout of ~1x image bytes,
    # replacing the old ~9x im2col materialization).
    xl = x.reshape(G, tb, C, HW).transpose(0, 2, 1, 3).reshape(G, C, L)

    # 3x3 tap validity masks (SAME zero padding), tiled per image.
    yy = jnp.arange(H)[:, None]
    xx = jnp.arange(W)[None, :]
    masks = []
    for oy in (-1, 0, 1):
        for ox in (-1, 0, 1):
            valid = ((yy + oy >= 0) & (yy + oy < H) &
                     (xx + ox >= 0) & (xx + ox < W))
            masks.append(jnp.tile(valid.astype(jnp.float32).reshape(1, HW), (1, tb)))
    mask = jnp.concatenate(masks, axis=0)                      # (9, L)

    # conv weight as (KCP, F_PAD) matmul weight; row ordering (ky, kx, c) must
    # match the kernel's tap loop (oy outer, ox inner, channel innermost).
    w_t = conv_w.transpose(2, 3, 1, 0).reshape(KC, F)
    w_t = jnp.pad(w_t, ((0, KCP - KC), (0, F_PAD - F)))
    b_row = jnp.pad(conv_b, (0, F_PAD - F)).reshape(1, F_PAD)

    kernel = functools.partial(_backbone_kernel, tb=tb, hw=HW, width=W, c=C, kcp=KCP)
    return pl.pallas_call(
        kernel,
        out_shape=jax.ShapeDtypeStruct((N, F_PAD), jnp.float32),
        grid=(G,),
        in_specs=[
            pl.BlockSpec((1, C, L), lambda g: (g, 0, 0)),
            pl.BlockSpec((9, L), lambda g: (0, 0)),
            pl.BlockSpec((KCP, F_PAD), lambda g: (0, 0)),
            pl.BlockSpec((1, F_PAD), lambda g: (0, 0)),
        ],
        out_specs=pl.BlockSpec((tb, F_PAD), lambda g: (g, 0)),
        compiler_params=pltpu.CompilerParams(
            dimension_semantics=("parallel",)),   # image blocks are independent
    )(xl, mask, w_t, b_row)


# ---------------- fused projector + predictor (per view) -------------------
def _bn_mlp(x, w1, b1, g, beta, w2, b2):
    """Linear -> BatchNorm1d (train mode, batch stats) -> ReLU -> Linear.

    BN is a single fused pass: one sum / sum-of-squares sweep, then one
    h*scale + shift sweep (gamma/beta folded into scale/shift), rsqrt on EUP.
    """
    h = jnp.dot(x, w1, preferred_element_type=jnp.float32) + b1        # (B, H)
    inv_n = 1.0 / h.shape[0]
    mu = jnp.sum(h, axis=0, keepdims=True) * inv_n
    var = jnp.sum(h * h, axis=0, keepdims=True) * inv_n - mu * mu      # biased
    scale = g * jax.lax.rsqrt(var + EPS_BN)
    shift = beta - mu * scale
    a = jnp.maximum(h * scale + shift, 0.0)
    return jnp.dot(a, w2, preferred_element_type=jnp.float32) + b2     # (B, P_PAD)


def _l2_normalize(v):
    # F.normalize(p=2, eps=1e-12): x / max(||x||, eps) == x * rsqrt(max(||x||^2, eps^2))
    ss = jnp.sum(v * v, axis=-1, keepdims=True)
    return v * jax.lax.rsqrt(jnp.maximum(ss, EPS_NORM * EPS_NORM))


def _heads_kernel(r_ref,
                  pw1_ref, pb1_ref, pg_ref, pbt_ref, pw2_ref, pb2_ref,
                  qw1_ref, qb1_ref, qg_ref, qbt_ref, qw2_ref, qb2_ref,
                  t_ref, q_ref):
    # One grid step per augmented view ("parallel" -> both v7x TensorCores used).
    x = r_ref[0]                                                       # (B, F_PAD)
    p = _bn_mlp(x, pw1_ref[...], pb1_ref[...], pg_ref[...], pbt_ref[...],
                pw2_ref[...], pb2_ref[...])                            # projector
    q = _bn_mlp(p, qw1_ref[...], qb1_ref[...], qg_ref[...], qbt_ref[...],
                qw2_ref[...], qb2_ref[...])                            # predictor
    # target encoder = deepcopy of the online encoder at forward time, so the
    # target projection equals the online projection numerically.
    t_ref[0] = _l2_normalize(p)     # normalized (target) projection of this view
    q_ref[0] = _l2_normalize(q)     # normalized online prediction of this view


def heads_projections(r2, proj_params, pred_params):
    """Projector + predictor for both views in ONE pallas_call (grid over views)."""
    V, B, Fp = r2.shape
    pw1, pb1, pg, pbt, pw2, pb2 = proj_params
    qw1, qb1, qg, qbt, qw2, qb2 = pred_params
    assert pw1.shape[0] == Fp and qw1.shape[0] == pw2.shape[1]
    H = pw1.shape[1]
    Pp = pw2.shape[1]

    def view3(shape):
        return pl.BlockSpec(shape, lambda v: (v, 0, 0))

    def const2(shape):
        return pl.BlockSpec(shape, lambda v: (0, 0))

    t_n, q_n = pl.pallas_call(
        _heads_kernel,
        out_shape=(jax.ShapeDtypeStruct((V, B, Pp), jnp.float32),
                   jax.ShapeDtypeStruct((V, B, Pp), jnp.float32)),
        grid=(V,),
        in_specs=[
            view3((1, B, Fp)),
            const2((Fp, H)), const2((1, H)), const2((1, H)), const2((1, H)),
            const2((H, Pp)), const2((1, Pp)),
            const2((Pp, H)), const2((1, H)), const2((1, H)), const2((1, H)),
            const2((H, Pp)), const2((1, Pp)),
        ],
        out_specs=(view3((1, B, Pp)), view3((1, B, Pp))),
        compiler_params=pltpu.CompilerParams(
            dimension_semantics=("parallel",)),   # one view per TensorCore on v7x
    )(r2, pw1, pb1, pg, pbt, pw2, pb2, qw1, qb1, qg, qbt, qw2, qb2)
    return t_n, q_n


# ------------------------- full BYOL forward -------------------------------
@jax.jit
def byol_forward(img1, img2, params):
    conv_w, conv_b = params["conv"]
    B = img1.shape[0]
    # single backbone pass over both augmented views
    x = jnp.concatenate([img1, img2], axis=0)                  # (2B, C, H, W)
    r = backbone_representation(x, conv_w, conv_b)             # (2B, F_PAD)
    r2 = r.reshape(2, B, r.shape[-1])                          # view-major stack
    t_n, q_n = heads_projections(r2, params["proj"], params["pred"])
    # cross-view BYOL loss: tiny epilogue on already-normalized vectors.
    loss_one = 2.0 - 2.0 * jnp.sum(q_n[0] * t_n[1], axis=-1)   # (B,)
    loss_two = 2.0 - 2.0 * jnp.sum(q_n[1] * t_n[0], axis=-1)   # (B,)
    return jnp.mean(loss_one + loss_two)


# ------------------------- parameter init ----------------------------------
def init_linear(key, fan_in, fan_out):
    kw, kb = jax.random.split(key)
    bound = 1.0 / float(fan_in) ** 0.5
    w = jax.random.uniform(kw, (fan_in, fan_out), jnp.float32, -bound, bound)
    b = jax.random.uniform(kb, (1, fan_out), jnp.float32, -bound, bound)
    return w, b


def init_conv(key, c_in, f_out):
    kw, kb = jax.random.split(key)
    fan_in = c_in * 9
    bound = 1.0 / float(fan_in) ** 0.5
    w = jax.random.uniform(kw, (f_out, c_in, 3, 3), jnp.float32, -bound, bound)
    b = jax.random.uniform(kb, (f_out,), jnp.float32, -bound, bound)
    return w, b


def init_mlp(key, dim, hidden, proj, dim_pad, proj_pad):
    k1, k2 = jax.random.split(key)
    w1, b1 = init_linear(k1, dim, hidden)
    w2, b2 = init_linear(k2, hidden, proj)
    # zero-pad to lane-dense padded feature dims: mathematically a no-op.
    w1 = jnp.pad(w1, ((0, dim_pad - dim), (0, 0)))
    w2 = jnp.pad(w2, ((0, 0), (0, proj_pad - proj)))
    b2 = jnp.pad(b2, ((0, 0), (0, proj_pad - proj)))
    gamma = jnp.ones((1, hidden), jnp.float32)   # BatchNorm1d default affine init
    beta = jnp.zeros((1, hidden), jnp.float32)
    return (w1, b1, gamma, beta, w2, b2)


if __name__ == "__main__":
    B, C, IMG = 2, 3, 16
    F_REPR, HIDDEN, PROJ = 32, 64, 32   # small analogues of (512, 4096, 256)
    F_PAD = _ceil_to(F_REPR, LANE)
    P_PAD = _ceil_to(PROJ, LANE)

    key = jax.random.PRNGKey(0)
    k_img1, k_img2, k_conv, k_proj, k_pred = jax.random.split(key, 5)

    img1 = jax.random.normal(k_img1, (B, C, IMG, IMG), jnp.float32)
    img2 = jax.random.normal(k_img2, (B, C, IMG, IMG), jnp.float32)

    params = {
        "conv": init_conv(k_conv, C, F_REPR),
        "proj": init_mlp(k_proj, F_REPR, HIDDEN, PROJ, F_PAD, P_PAD),
        "pred": init_mlp(k_pred, PROJ, HIDDEN, PROJ, P_PAD, P_PAD),
    }

    loss = byol_forward(img1, img2, params)
    jax.block_until_ready(loss)
    assert loss.shape == () and bool(jnp.isfinite(loss))
    print("KERNEL_OK")
</pallas_src>

<mosaic_0001>
module attributes {stable_mosaic.version = 11 : i64} {
  func.func @_backbone_kernel(%arg0: i32, %arg1: memref<1x3x1024xf32, #tpu.memory_space<vmem>>, %arg2: memref<9x1024xf32, #tpu.memory_space<vmem>>, %arg3: memref<32x128xf32, #tpu.memory_space<vmem>>, %arg4: memref<1x128xf32, #tpu.memory_space<vmem>>, %arg5: memref<4x128xf32, #tpu.memory_space<vmem>>) attributes {dimension_semantics = [#tpu.dimension_semantics<parallel>], iteration_bounds = array<i64: 1>, scalar_prefetch = 0 : i64, scratch_operands = 0 : i64, tpu.core_type = #tpu.core_type<tc>, window_params = [{transform_indices = @transform_0, window_bounds = array<i64: 1, 3, 1024>}, {pipeline_mode = #tpu.pipeline_mode<synchronous>, transform_indices = @transform_1, window_bounds = array<i64: 9, 1024>}, {pipeline_mode = #tpu.pipeline_mode<synchronous>, transform_indices = @transform_2, window_bounds = array<i64: 32, 128>}, {pipeline_mode = #tpu.pipeline_mode<synchronous>, transform_indices = @transform_3, window_bounds = array<i64: 1, 128>}, {transform_indices = @transform_4, window_bounds = array<i64: 4, 128>}]} {
    %c0 = arith.constant 0 : index
    %c0_0 = arith.constant 0 : index
    %c0_1 = arith.constant 0 : index
    %0 = vector.load %arg1[%c0, %c0_0, %c0_1] : memref<1x3x1024xf32, #tpu.memory_space<vmem>>, vector<1x3x1024xf32>
    %1 = vector.shape_cast %0 : vector<1x3x1024xf32> to vector<3x1024xf32>
    %c0_2 = arith.constant 0 : index
    %c0_3 = arith.constant 0 : index
    %2 = vector.load %arg2[%c0_2, %c0_3] : memref<9x1024xf32, #tpu.memory_space<vmem>>, vector<9x1024xf32>
    %c17_i32 = arith.constant 17 : i32
    %3 = tpu.dynamic_rotate %1 by %c17_i32 dim 1 : vector<3x1024xf32>, i32 -> vector<3x1024xf32>
    %4 = vector.extract_strided_slice %2 {offsets = [0, 0], sizes = [1, 1024], strides = [1, 1]} : vector<9x1024xf32> to vector<1x1024xf32>
    %5 = vector.broadcast %4 : vector<1x1024xf32> to vector<3x1024xf32>
    %6 = arith.mulf %3, %5 : vector<3x1024xf32>
    %c16_i32 = arith.constant 16 : i32
    %7 = tpu.dynamic_rotate %1 by %c16_i32 dim 1 : vector<3x1024xf32>, i32 -> vector<3x1024xf32>
    %8 = vector.extract_strided_slice %2 {offsets = [1, 0], sizes = [1, 1024], strides = [1, 1]} : vector<9x1024xf32> to vector<1x1024xf32>
    %9 = vector.broadcast %8 : vector<1x1024xf32> to vector<3x1024xf32>
    %10 = arith.mulf %7, %9 : vector<3x1024xf32>
    %c15_i32 = arith.constant 15 : i32
    %11 = tpu.dynamic_rotate %1 by %c15_i32 dim 1 : vector<3x1024xf32>, i32 -> vector<3x1024xf32>
    %12 = vector.extract_strided_slice %2 {offsets = [2, 0], sizes = [1, 1024], strides = [1, 1]} : vector<9x1024xf32> to vector<1x1024xf32>
    %13 = vector.broadcast %12 : vector<1x1024xf32> to vector<3x1024xf32>
    %14 = arith.mulf %11, %13 : vector<3x1024xf32>
    %c1_i32 = arith.constant 1 : i32
    %15 = tpu.dynamic_rotate %1 by %c1_i32 dim 1 : vector<3x1024xf32>, i32 -> vector<3x1024xf32>
    %16 = vector.extract_strided_slice %2 {offsets = [3, 0], sizes = [1, 1024], strides = [1, 1]} : vector<9x1024xf32> to vector<1x1024xf32>
    %17 = vector.broadcast %16 : vector<1x1024xf32> to vector<3x1024xf32>
    %18 = arith.mulf %15, %17 : vector<3x1024xf32>
    %19 = vector.extract_strided_slice %2 {offsets = [4, 0], sizes = [1, 1024], strides = [1, 1]} : vector<9x1024xf32> to vector<1x1024xf32>
    %20 = vector.broadcast %19 : vector<1x1024xf32> to vector<3x1024xf32>
    %21 = arith.mulf %1, %20 : vector<3x1024xf32>
    %c1023_i32 = arith.constant 1023 : i32
    %22 = tpu.dynamic_rotate %1 by %c1023_i32 dim 1 : vector<3x1024xf32>, i32 -> vector<3x1024xf32>
    %23 = vector.extract_strided_slice %2 {offsets = [5, 0], sizes = [1, 1024], strides = [1, 1]} : vector<9x1024xf32> to vector<1x1024xf32>
    %24 = vector.broadcast %23 : vector<1x1024xf32> to vector<3x1024xf32>
    %25 = arith.mulf %22, %24 : vector<3x1024xf32>
    %c1009_i32 = arith.constant 1009 : i32
    %26 = tpu.dynamic_rotate %1 by %c1009_i32 dim 1 : vector<3x1024xf32>, i32 -> vector<3x1024xf32>
    %27 = vector.extract_strided_slice %2 {offsets = [6, 0], sizes = [1, 1024], strides = [1, 1]} : vector<9x1024xf32> to vector<1x1024xf32>
    %28 = vector.broadcast %27 : vector<1x1024xf32> to vector<3x1024xf32>
    %29 = arith.mulf %26, %28 : vector<3x1024xf32>
    %c1008_i32 = arith.constant 1008 : i32
    %30 = tpu.dynamic_rotate %1 by %c1008_i32 dim 1 : vector<3x1024xf32>, i32 -> vector<3x1024xf32>
    %31 = vector.extract_strided_slice %2 {offsets = [7, 0], sizes = [1, 1024], strides = [1, 1]} : vector<9x1024xf32> to vector<1x1024xf32>
    %32 = vector.broadcast %31 : vector<1x1024xf32> to vector<3x1024xf32>
    %33 = arith.mulf %30, %32 : vector<3x1024xf32>
    %c1007_i32 = arith.constant 1007 : i32
    %34 = tpu.dynamic_rotate %1 by %c1007_i32 dim 1 : vector<3x1024xf32>, i32 -> vector<3x1024xf32>
    %35 = vector.extract_strided_slice %2 {offsets = [8, 0], sizes = [1, 1024], strides = [1, 1]} : vector<9x1024xf32> to vector<1x1024xf32>
    %36 = vector.broadcast %35 : vector<1x1024xf32> to vector<3x1024xf32>
    %37 = arith.mulf %34, %36 : vector<3x1024xf32>
    %cst = arith.constant 0.000000e+00 : f32
    %38 = vector.broadcast %cst : f32 to vector<5x1024xf32>
    %39 = tpu.concatenate %6, %10, %14, %18, %21, %25, %29, %33, %37, %38 in 0 : vector<3x1024xf32>, vector<3x1024xf32>, vector<3x1024xf32>, vector<3x1024xf32>, vector<3x1024xf32>, vector<3x1024xf32>, vector<3x1024xf32>, vector<3x1024xf32>, vector<3x1024xf32>, vector<5x1024xf32> -> vector<32x1024xf32>
    %c0_4 = arith.constant 0 : index
    %c0_5 = arith.constant 0 : index
    %40 = vector.load %arg3[%c0_4, %c0_5] : memref<32x128xf32, #tpu.memory_space<vmem>>, vector<32x128xf32>
    %cst_6 = arith.constant dense<0.000000e+00> : vector<1024x128xf32>
    %41 = tpu.matmul %39, %40, %cst_6 {dimension_numbers = #tpu.dot_dimension_numbers<[0], [0], [1], [1], [0, 1, 1, 1], [], []>} : vector<32x1024xf32>, vector<32x128xf32>, vector<1024x128xf32> -> vector<1024x128xf32>
    %c0_7 = arith.constant 0 : index
    %c0_8 = arith.constant 0 : index
    %42 = vector.load %arg4[%c0_7, %c0_8] : memref<1x128xf32, #tpu.memory_space<vmem>>, vector<1x128xf32>
    %43 = vector.broadcast %42 : vector<1x128xf32> to vector<1024x128xf32>
    %44 = arith.addf %41, %43 : vector<1024x128xf32>
    %cst_9 = arith.constant 0.000000e+00 : f32
    %45 = vector.broadcast %cst_9 : f32 to vector<1024x128xf32>
    %46 = arith.maximumf %44, %45 : vector<1024x128xf32>
    %47 = vector.extract_strided_slice %46 {offsets = [0, 0], sizes = [256, 128], strides = [1, 1]} : vector<1024x128xf32> to vector<256x128xf32>
    %cst_10 = arith.constant dense<0.000000e+00> : vector<128xf32>
    %48 = vector.multi_reduction <add>, %47, %cst_10 [0] : vector<256x128xf32> to vector<128xf32>
    %49 = vector.shape_cast %48 : vector<128xf32> to vector<1x128xf32>
    %cst_11 = arith.constant 2.560000e+02 : f32
    %50 = vector.broadcast %cst_11 : f32 to vector<1x128xf32>
    %51 = arith.divf %49, %50 : vector<1x128xf32>
    %52 = vector.extract_strided_slice %46 {offsets = [256, 0], sizes = [256, 128], strides = [1, 1]} : vector<1024x128xf32> to vector<256x128xf32>
    %cst_12 = arith.constant dense<0.000000e+00> : vector<128xf32>
    %53 = vector.multi_reduction <add>, %52, %cst_12 [0] : vector<256x128xf32> to vector<128xf32>
    %54 = vector.shape_cast %53 : vector<128xf32> to vector<1x128xf32>
    %cst_13 = arith.constant 2.560000e+02 : f32
    %55 = vector.broadcast %cst_13 : f32 to vector<1x128xf32>
    %56 = arith.divf %54, %55 : vector<1x128xf32>
    %57 = vector.extract_strided_slice %46 {offsets = [512, 0], sizes = [256, 128], strides = [1, 1]} : vector<1024x128xf32> to vector<256x128xf32>
    %cst_14 = arith.constant dense<0.000000e+00> : vector<128xf32>
    %58 = vector.multi_reduction <add>, %57, %cst_14 [0] : vector<256x128xf32> to vector<128xf32>
    %59 = vector.shape_cast %58 : vector<128xf32> to vector<1x128xf32>
    %cst_15 = arith.constant 2.560000e+02 : f32
    %60 = vector.broadcast %cst_15 : f32 to vector<1x128xf32>
    %61 = arith.divf %59, %60 : vector<1x128xf32>
    %62 = vector.extract_strided_slice %46 {offsets = [768, 0], sizes = [256, 128], strides = [1, 1]} : vector<1024x128xf32> to vector<256x128xf32>
    %cst_16 = arith.constant dense<0.000000e+00> : vector<128xf32>
    %63 = vector.multi_reduction <add>, %62, %cst_16 [0] : vector<256x128xf32> to vector<128xf32>
    %64 = vector.shape_cast %63 : vector<128xf32> to vector<1x128xf32>
    %cst_17 = arith.constant 2.560000e+02 : f32
    %65 = vector.broadcast %cst_17 : f32 to vector<1x128xf32>
    %66 = arith.divf %64, %65 : vector<1x128xf32>
    %67 = tpu.concatenate %51, %56, %61, %66 in 0 : vector<1x128xf32>, vector<1x128xf32>, vector<1x128xf32>, vector<1x128xf32> -> vector<4x128xf32>
    %c0_18 = arith.constant 0 : index
    %c0_19 = arith.constant 0 : index
    %68 = vector.load %arg5[%c0_18, %c0_19] : memref<4x128xf32, #tpu.memory_space<vmem>>, vector<4x128xf32>
    tpu.vector_store %arg5[%c0_18, %c0_19], %67 {strides = array<i32>} : memref<4x128xf32, #tpu.memory_space<vmem>>, vector<4x128xf32>,
    return
  }
  func.func @transform_0(%arg0: i32) -> (i32, i32, i32) {
    %c0_i32 = arith.constant 0 : i32
    %c0_i32_0 = arith.constant 0 : i32
    %c0_i32_1 = arith.constant 0 : i32
    return %arg0, %c0_i32, %c0_i32_0 : i32, i32, i32
  }
  func.func @transform_1(%arg0: i32) -> (i32, i32) {
    %c0_i32 = arith.constant 0 : i32
    %c0_i32_0 = arith.constant 0 : i32
    %c0_i32_1 = arith.constant 0 : i32
    return %c0_i32, %c0_i32_0 : i32, i32
  }
  func.func @transform_2(%arg0: i32) -> (i32, i32) {
    %c0_i32 = arith.constant 0 : i32
    %c0_i32_0 = arith.constant 0 : i32
    %c0_i32_1 = arith.constant 0 : i32
    return %c0_i32, %c0_i32_0 : i32, i32
  }
  func.func @transform_3(%arg0: i32) -> (i32, i32) {
    %c0_i32 = arith.constant 0 : i32
    %c0_i32_0 = arith.constant 0 : i32
    %c0_i32_1 = arith.constant 0 : i32
    return %c0_i32, %c0_i32_0 : i32, i32
  }
  func.func @transform_4(%arg0: i32) -> (i32, i32) {
    %c0_i32 = arith.constant 0 : i32
    %c0_i32_0 = arith.constant 0 : i32
    return %arg0, %c0_i32 : i32, i32
  }
}

module attributes {stable_mosaic.version = 11 : i64} {
  func.func @_heads_kernel(%arg0: i32, %arg1: memref<1x2x128xf32, #tpu.memory_space<vmem>>, %arg2: memref<128x64xf32, #tpu.memory_space<vmem>>, %arg3: memref<1x64xf32, #tpu.memory_space<vmem>>, %arg4: memref<1x64xf32, #tpu.memory_space<vmem>>, %arg5: memref<1x64xf32, #tpu.memory_space<vmem>>, %arg6: memref<64x128xf32, #tpu.memory_space<vmem>>, %arg7: memref<1x128xf32, #tpu.memory_space<vmem>>, %arg8: memref<128x64xf32, #tpu.memory_space<vmem>>, %arg9: memref<1x64xf32, #tpu.memory_space<vmem>>, %arg10: memref<1x64xf32, #tpu.memory_space<vmem>>, %arg11: memref<1x64xf32, #tpu.memory_space<vmem>>, %arg12: memref<64x128xf32, #tpu.memory_space<vmem>>, %arg13: memref<1x128xf32, #tpu.memory_space<vmem>>, %arg14: memref<1x2x128xf32, #tpu.memory_space<vmem>>, %arg15: memref<1x2x128xf32, #tpu.memory_space<vmem>>) attributes {dimension_semantics = [#tpu.dimension_semantics<parallel>], iteration_bounds = array<i64: 2>, scalar_prefetch = 0 : i64, scratch_operands = 0 : i64, tpu.core_type = #tpu.core_type<tc>, window_params = [{transform_indices = @transform_0, window_bounds = array<i64: 1, 2, 128>}, {pipeline_mode = #tpu.pipeline_mode<synchronous>, transform_indices = @transform_1, window_bounds = array<i64: 128, 64>}, {pipeline_mode = #tpu.pipeline_mode<synchronous>, transform_indices = @transform_2, window_bounds = array<i64: 1, 64>}, {pipeline_mode = #tpu.pipeline_mode<synchronous>, transform_indices = @transform_3, window_bounds = array<i64: 1, 64>}, {pipeline_mode = #tpu.pipeline_mode<synchronous>, transform_indices = @transform_4, window_bounds = array<i64: 1, 64>}, {pipeline_mode = #tpu.pipeline_mode<synchronous>, transform_indices = @transform_5, window_bounds = array<i64: 64, 128>}, {pipeline_mode = #tpu.pipeline_mode<synchronous>, transform_indices = @transform_6, window_bounds = array<i64: 1, 128>}, {pipeline_mode = #tpu.pipeline_mode<synchronous>, transform_indices = @transform_7, window_bounds = array<i64: 128, 64>}, {pipeline_mode = #tpu.pipeline_mode<synchronous>, transform_indices = @transform_8, window_bounds = array<i64: 1, 64>}, {pipeline_mode = #tpu.pipeline_mode<synchronous>, transform_indices = @transform_9, window_bounds = array<i64: 1, 64>}, {pipeline_mode = #tpu.pipeline_mode<synchronous>, transform_indices = @transform_10, window_bounds = array<i64: 1, 64>}, {pipeline_mode = #tpu.pipeline_mode<synchronous>, transform_indices = @transform_11, window_bounds = array<i64: 64, 128>}, {pipeline_mode = #tpu.pipeline_mode<synchronous>, transform_indices = @transform_12, window_bounds = array<i64: 1, 128>}, {transform_indices = @transform_13, window_bounds = array<i64: 1, 2, 128>}, {transform_indices = @transform_14, window_bounds = array<i64: 1, 2, 128>}]} {
    %c0 = arith.constant 0 : index
    %c0_0 = arith.constant 0 : index
    %c0_1 = arith.constant 0 : index
    %0 = vector.load %arg1[%c0, %c0_0, %c0_1] : memref<1x2x128xf32, #tpu.memory_space<vmem>>, vector<1x2x128xf32>
    %1 = vector.shape_cast %0 : vector<1x2x128xf32> to vector<2x128xf32>
    %c0_2 = arith.constant 0 : index
    %c0_3 = arith.constant 0 : index
    %2 = vector.load %arg2[%c0_2, %c0_3] : memref<128x64xf32, #tpu.memory_space<vmem>>, vector<128x64xf32>
    %c0_4 = arith.constant 0 : index
    %c0_5 = arith.constant 0 : index
    %3 = vector.load %arg3[%c0_4, %c0_5] : memref<1x64xf32, #tpu.memory_space<vmem>>, vector<1x64xf32>
    %c0_6 = arith.constant 0 : index
    %c0_7 = arith.constant 0 : index
    %4 = vector.load %arg4[%c0_6, %c0_7] : memref<1x64xf32, #tpu.memory_space<vmem>>, vector<1x64xf32>
    %c0_8 = arith.constant 0 : index
    %c0_9 = arith.constant 0 : index
    %5 = vector.load %arg5[%c0_8, %c0_9] : memref<1x64xf32, #tpu.memory_space<vmem>>, vector<1x64xf32>
    %c0_10 = arith.constant 0 : index
    %c0_11 = arith.constant 0 : index
    %6 = vector.load %arg6[%c0_10, %c0_11] : memref<64x128xf32, #tpu.memory_space<vmem>>, vector<64x128xf32>
    %c0_12 = arith.constant 0 : index
    %c0_13 = arith.constant 0 : index
    %7 = vector.load %arg7[%c0_12, %c0_13] : memref<1x128xf32, #tpu.memory_space<vmem>>, vector<1x128xf32>
    %cst = arith.constant dense<0.000000e+00> : vector<2x64xf32>
    %8 = tpu.matmul %1, %2, %cst {dimension_numbers = #tpu.dot_dimension_numbers<[1], [0], [0], [1], [0, 0, 1, 1], [], []>} : vector<2x128xf32>, vector<128x64xf32>, vector<2x64xf32> -> vector<2x64xf32>
    %9 = vector.broadcast %3 : vector<1x64xf32> to vector<2x64xf32>
    %10 = arith.addf %8, %9 : vector<2x64xf32>
    %cst_14 = arith.constant dense<0.000000e+00> : vector<64xf32>
    %11 = vector.multi_reduction <add>, %10, %cst_14 [0] : vector<2x64xf32> to vector<64xf32>
    %12 = vector.shape_cast %11 : vector<64xf32> to vector<1x64xf32>
    %cst_15 = arith.constant 5.000000e-01 : f32
    %13 = vector.broadcast %cst_15 : f32 to vector<1x64xf32>
    %14 = arith.mulf %12, %13 : vector<1x64xf32>
    %15 = arith.mulf %10, %10 : vector<2x64xf32>
    %cst_16 = arith.constant dense<0.000000e+00> : vector<64xf32>
    %16 = vector.multi_reduction <add>, %15, %cst_16 [0] : vector<2x64xf32> to vector<64xf32>
    %17 = vector.shape_cast %16 : vector<64xf32> to vector<1x64xf32>
    %cst_17 = arith.constant 5.000000e-01 : f32
    %18 = vector.broadcast %cst_17 : f32 to vector<1x64xf32>
    %19 = arith.mulf %17, %18 : vector<1x64xf32>
    %20 = arith.mulf %14, %14 : vector<1x64xf32>
    %21 = arith.subf %19, %20 : vector<1x64xf32>
    %cst_18 = arith.constant 9.99999974E-6 : f32
    %22 = vector.broadcast %cst_18 : f32 to vector<1x64xf32>
    %23 = arith.addf %21, %22 : vector<1x64xf32>
    %24 = math.rsqrt %23 : vector<1x64xf32>
    %25 = arith.mulf %4, %24 : vector<1x64xf32>
    %26 = arith.mulf %14, %25 : vector<1x64xf32>
    %27 = arith.subf %5, %26 : vector<1x64xf32>
    %28 = vector.broadcast %25 : vector<1x64xf32> to vector<2x64xf32>
    %29 = arith.mulf %10, %28 : vector<2x64xf32>
    %30 = vector.broadcast %27 : vector<1x64xf32> to vector<2x64xf32>
    %31 = arith.addf %29, %30 : vector<2x64xf32>
    %cst_19 = arith.constant 0.000000e+00 : f32
    %32 = vector.broadcast %cst_19 : f32 to vector<2x64xf32>
    %33 = arith.maximumf %31, %32 : vector<2x64xf32>
    %cst_20 = arith.constant dense<0.000000e+00> : vector<2x128xf32>
    %34 = tpu.matmul %33, %6, %cst_20 {dimension_numbers = #tpu.dot_dimension_numbers<[1], [0], [0], [1], [0, 0, 1, 1], [], []>} : vector<2x64xf32>, vector<64x128xf32>, vector<2x128xf32> -> vector<2x128xf32>
    %35 = vector.broadcast %7 : vector<1x128xf32> to vector<2x128xf32>
    %36 = arith.addf %34, %35 : vector<2x128xf32>
    %c0_21 = arith.constant 0 : index
    %c0_22 = arith.constant 0 : index
    %37 = vector.load %arg8[%c0_21, %c0_22] : memref<128x64xf32, #tpu.memory_space<vmem>>, vector<128x64xf32>
    %c0_23 = arith.constant 0 : index
    %c0_24 = arith.constant 0 : index
    %38 = vector.load %arg9[%c0_23, %c0_24] : memref<1x64xf32, #tpu.memory_space<vmem>>, vector<1x64xf32>
    %c0_25 = arith.constant 0 : index
    %c0_26 = arith.constant 0 : index
    %39 = vector.load %arg10[%c0_25, %c0_26] : memref<1x64xf32, #tpu.memory_space<vmem>>, vector<1x64xf32>
    %c0_27 = arith.constant 0 : index
    %c0_28 = arith.constant 0 : index
    %40 = vector.load %arg11[%c0_27, %c0_28] : memref<1x64xf32, #tpu.memory_space<vmem>>, vector<1x64xf32>
    %c0_29 = arith.constant 0 : index
    %c0_30 = arith.constant 0 : index
    %41 = vector.load %arg12[%c0_29, %c0_30] : memref<64x128xf32, #tpu.memory_space<vmem>>, vector<64x128xf32>
    %c0_31 = arith.constant 0 : index
    %c0_32 = arith.constant 0 : index
    %42 = vector.load %arg13[%c0_31, %c0_32] : memref<1x128xf32, #tpu.memory_space<vmem>>, vector<1x128xf32>
    %cst_33 = arith.constant dense<0.000000e+00> : vector<2x64xf32>
    %43 = tpu.matmul %36, %37, %cst_33 {dimension_numbers = #tpu.dot_dimension_numbers<[1], [0], [0], [1], [0, 0, 1, 1], [], []>} : vector<2x128xf32>, vector<128x64xf32>, vector<2x64xf32> -> vector<2x64xf32>
    %44 = vector.broadcast %38 : vector<1x64xf32> to vector<2x64xf32>
    %45 = arith.addf %43, %44 : vector<2x64xf32>
    %cst_34 = arith.constant dense<0.000000e+00> : vector<64xf32>
    %46 = vector.multi_reduction <add>, %45, %cst_34 [0] : vector<2x64xf32> to vector<64xf32>
    %47 = vector.shape_cast %46 : vector<64xf32> to vector<1x64xf32>
    %cst_35 = arith.constant 5.000000e-01 : f32
    %48 = vector.broadcast %cst_35 : f32 to vector<1x64xf32>
    %49 = arith.mulf %47, %48 : vector<1x64xf32>
    %50 = arith.mulf %45, %45 : vector<2x64xf32>
    %cst_36 = arith.constant dense<0.000000e+00> : vector<64xf32>
    %51 = vector.multi_reduction <add>, %50, %cst_36 [0] : vector<2x64xf32> to vector<64xf32>
    %52 = vector.shape_cast %51 : vector<64xf32> to vector<1x64xf32>
    %cst_37 = arith.constant 5.000000e-01 : f32
    %53 = vector.broadcast %cst_37 : f32 to vector<1x64xf32>
    %54 = arith.mulf %52, %53 : vector<1x64xf32>
    %55 = arith.mulf %49, %49 : vector<1x64xf32>
    %56 = arith.subf %54, %55 : vector<1x64xf32>
    %cst_38 = arith.constant 9.99999974E-6 : f32
    %57 = vector.broadcast %cst_38 : f32 to vector<1x64xf32>
    %58 = arith.addf %56, %57 : vector<1x64xf32>
    %59 = math.rsqrt %58 : vector<1x64xf32>
    %60 = arith.mulf %39, %59 : vector<1x64xf32>
    %61 = arith.mulf %49, %60 : vector<1x64xf32>
    %62 = arith.subf %40, %61 : vector<1x64xf32>
    %63 = vector.broadcast %60 : vector<1x64xf32> to vector<2x64xf32>
    %64 = arith.mulf %45, %63 : vector<2x64xf32>
    %65 = vector.broadcast %62 : vector<1x64xf32> to vector<2x64xf32>
    %66 = arith.addf %64, %65 : vector<2x64xf32>
    %cst_39 = arith.constant 0.000000e+00 : f32
    %67 = vector.broadcast %cst_39 : f32 to vector<2x64xf32>
    %68 = arith.maximumf %66, %67 : vector<2x64xf32>
    %cst_40 = arith.constant dense<0.000000e+00> : vector<2x128xf32>
    %69 = tpu.matmul %68, %41, %cst_40 {dimension_numbers = #tpu.dot_dimension_numbers<[1], [0], [0], [1], [0, 0, 1, 1], [], []>} : vector<2x64xf32>, vector<64x128xf32>, vector<2x128xf32> -> vector<2x128xf32>
    %70 = vector.broadcast %42 : vector<1x128xf32> to vector<2x128xf32>
    %71 = arith.addf %69, %70 : vector<2x128xf32>
    %72 = arith.mulf %36, %36 : vector<2x128xf32>
    %cst_41 = arith.constant dense<0.000000e+00> : vector<2xf32>
    %73 = vector.multi_reduction <add>, %72, %cst_41 [1] : vector<2x128xf32> to vector<2xf32>
    %74 = vector.shape_cast %73 : vector<2xf32> to vector<2x1xf32>
    %cst_42 = arith.constant 1.000000e-24 : f32
    %75 = vector.broadcast %cst_42 : f32 to vector<2x1xf32>
    %76 = arith.maximumf %74, %75 : vector<2x1xf32>
    %77 = math.rsqrt %76 : vector<2x1xf32>
    %78 = vector.broadcast %77 : vector<2x1xf32> to vector<2x128xf32>
    %79 = arith.mulf %36, %78 : vector<2x128xf32>
    %c0_43 = arith.constant 0 : index
    %c0_44 = arith.constant 0 : index
    %c0_45 = arith.constant 0 : index
    %80 = vector.load %arg14[%c0_43, %c0_44, %c0_45] : memref<1x2x128xf32, #tpu.memory_space<vmem>>, vector<1x2x128xf32>
    %81 = vector.shape_cast %80 : vector<1x2x128xf32> to vector<2x128xf32>
    %82 = vector.shape_cast %79 : vector<2x128xf32> to vector<1x2x128xf32>
    tpu.vector_store %arg14[%c0_43, %c0_44, %c0_45], %82 {strides = array<i32>} : memref<1x2x128xf32, #tpu.memory_space<vmem>>, vector<1x2x128xf32>,
    %83 = arith.mulf %71, %71 : vector<2x128xf32>
    %cst_46 = arith.constant dense<0.000000e+00> : vector<2xf32>
    %84 = vector.multi_reduction <add>, %83, %cst_46 [1] : vector<2x128xf32> to vector<2xf32>
    %85 = vector.shape_cast %84 : vector<2xf32> to vector<2x1xf32>
    %cst_47 = arith.constant 1.000000e-24 : f32
    %86 = vector.broadcast %cst_47 : f32 to vector<2x1xf32>
    %87 = arith.maximumf %85, %86 : vector<2x1xf32>
    %88 = math.rsqrt %87 : vector<2x1xf32>
    %89 = vector.broadcast %88 : vector<2x1xf32> to vector<2x128xf32>
    %90 = arith.mulf %71, %89 : vector<2x128xf32>
    %c0_48 = arith.constant 0 : index
    %c0_49 = arith.constant 0 : index
    %c0_50 = arith.constant 0 : index
    %91 = vector.load %arg15[%c0_48, %c0_49, %c0_50] : memref<1x2x128xf32, #tpu.memory_space<vmem>>, vector<1x2x128xf32>
    %92 = vector.shape_cast %91 : vector<1x2x128xf32> to vector<2x128xf32>
    %93 = vector.shape_cast %90 : vector<2x128xf32> to vector<1x2x128xf32>
    tpu.vector_store %arg15[%c0_48, %c0_49, %c0_50], %93 {strides = array<i32>} : memref<1x2x128xf32, #tpu.memory_space<vmem>>, vector<1x2x128xf32>,
    return
  }
  func.func @transform_0(%arg0: i32) -> (i32, i32, i32) {
    %c0_i32 = arith.constant 0 : i32
    %c0_i32_0 = arith.constant 0 : i32
    %c0_i32_1 = arith.constant 0 : i32
    return %arg0, %c0_i32, %c0_i32_0 : i32, i32, i32
  }
  func.func @transform_1(%arg0: i32) -> (i32, i32) {
    %c0_i32 = arith.constant 0 : i32
    %c0_i32_0 = arith.constant 0 : i32
    %c0_i32_1 = arith.constant 0 : i32
    return %c0_i32, %c0_i32_0 : i32, i32
  }
  func.func @transform_2(%arg0: i32) -> (i32, i32) {
    %c0_i32 = arith.constant 0 : i32
    %c0_i32_0 = arith.constant 0 : i32
    %c0_i32_1 = arith.constant 0 : i32
    return %c0_i32, %c0_i32_0 : i32, i32
  }
  func.func @transform_3(%arg0: i32) -> (i32, i32) {
    %c0_i32 = arith.constant 0 : i32
    %c0_i32_0 = arith.constant 0 : i32
    %c0_i32_1 = arith.constant 0 : i32
    return %c0_i32, %c0_i32_0 : i32, i32
  }
  func.func @transform_4(%arg0: i32) -> (i32, i32) {
    %c0_i32 = arith.constant 0 : i32
    %c0_i32_0 = arith.constant 0 : i32
    %c0_i32_1 = arith.constant 0 : i32
    return %c0_i32, %c0_i32_0 : i32, i32
  }
  func.func @transform_5(%arg0: i32) -> (i32, i32) {
    %c0_i32 = arith.constant 0 : i32
    %c0_i32_0 = arith.constant 0 : i32
    %c0_i32_1 = arith.constant 0 : i32
    return %c0_i32, %c0_i32_0 : i32, i32
  }
  func.func @transform_6(%arg0: i32) -> (i32, i32) {
    %c0_i32 = arith.constant 0 : i32
    %c0_i32_0 = arith.constant 0 : i32
    %c0_i32_1 = arith.constant 0 : i32
    return %c0_i32, %c0_i32_0 : i32, i32
  }
  func.func @transform_7(%arg0: i32) -> (i32, i32) {
    %c0_i32 = arith.constant 0 : i32
    %c0_i32_0 = arith.constant 0 : i32
    %c0_i32_1 = arith.constant 0 : i32
    return %c0_i32, %c0_i32_0 : i32, i32
  }
  func.func @transform_8(%arg0: i32) -> (i32, i32) {
    %c0_i32 = arith.constant 0 : i32
    %c0_i32_0 = arith.constant 0 : i32
    %c0_i32_1 = arith.constant 0 : i32
    return %c0_i32, %c0_i32_0 : i32, i32
  }
  func.func @transform_9(%arg0: i32) -> (i32, i32) {
    %c0_i32 = arith.constant 0 : i32
    %c0_i32_0 = arith.constant 0 : i32
    %c0_i32_1 = arith.constant 0 : i32
    return %c0_i32, %c0_i32_0 : i32, i32
  }
  func.func @transform_10(%arg0: i32) -> (i32, i32) {
    %c0_i32 = arith.constant 0 : i32
    %c0_i32_0 = arith.constant 0 : i32
    %c0_i32_1 = arith.constant 0 : i32
    return %c0_i32, %c0_i32_0 : i32, i32
  }
  func.func @transform_11(%arg0: i32) -> (i32, i32) {
    %c0_i32 = arith.constant 0 : i32
    %c0_i32_0 = arith.constant 0 : i32
    %c0_i32_1 = arith.constant 0 : i32
    return %c0_i32, %c0_i32_0 : i32, i32
  }
  func.func @transform_12(%arg0: i32) -> (i32, i32) {
    %c0_i32 = arith.constant 0 : i32
    %c0_i32_0 = arith.constant 0 : i32
    %c0_i32_1 = arith.constant 0 : i32
    return %c0_i32, %c0_i32_0 : i32, i32
  }
  func.func @transform_13(%arg0: i32) -> (i32, i32, i32) {
    %c0_i32 = arith.constant 0 : i32
    %c0_i32_0 = arith.constant 0 : i32
    %c0_i32_1 = arith.constant 0 : i32
    return %arg0, %c0_i32, %c0_i32_0 : i32, i32, i32
  }
  func.func @transform_14(%arg0: i32) -> (i32, i32, i32) {
    %c0_i32 = arith.constant 0 : i32
    %c0_i32_0 = arith.constant 0 : i32
    %c0_i32_1 = arith.constant 0 : i32
    return %arg0, %c0_i32, %c0_i32_0 : i32, i32, i32
  }
}

</mosaic_0001>

<bundles_post_ra>
// kernel: byol_forward.3
= control target key start
LH: loop header
LB: loop body
LE: loop exit
PB: predicated region body
PF: predicated region fallthrough
CT: control target
= control target key end

     0   :  { %s1301_s29 = smov 0   ;;  %s1568_s0 = inlined_call_operand.vmem [shape: f32[2,2,128], index: 0, kind: input, shape index: {}]   ;;  %s1569_s1 = inlined_call_operand.vmem [shape: f32[128,64], index: 1, kind: input, shape index: {}]   ;;  %s1570_s2 = inlined_call_operand.vmem [shape: f32[1,64], index: 2, kind: input, shape index: {}]   ;;  %s1571_s3 = inlined_call_operand.vmem [shape: f32[1,64], index: 3, kind: input, shape index: {}]   ;;  %s1572_s4 = inlined_call_operand.vmem [shape: f32[1,64], index: 4, kind: input, shape index: {}]   ;;  %s1573_s5 = inlined_call_operand.vmem [shape: f32[64,128], index: 5, kind: input, shape index: {}]   ;;  %s1574_s6 = inlined_call_operand.vmem [shape: f32[1,128], index: 6, kind: input, shape index: {}]   ;;  %s1575_s7 = inlined_call_operand.vmem [shape: f32[128,64], index: 7, kind: input, shape index: {}]   ;;  %s1576_s8 = inlined_call_operand.vmem [shape: f32[1,64], index: 8, kind: input, shape index: {}]   ;;  %s1577_s9 = inlined_call_operand.vmem [shape: f32[1,64], index: 9, kind: input, shape index: {}]   ;;  %s1578_s10 = inlined_call_operand.vmem [shape: f32[1,64], index: 10, kind: input, shape index: {}]   ;;  %s1579_s11 = inlined_call_operand.vmem [shape: f32[64,128], index: 11, kind: input, shape index: {}]   ;;  %s1580_s12 = inlined_call_operand.vmem [shape: f32[1,128], index: 12, kind: input, shape index: {}]   ;;  %s1581_s13 = inlined_call_operand.vmem [shape: f32[2,2,128], index: 13, kind: output, shape index: {0}]   ;;  %s1582_s14 = inlined_call_operand.vmem [shape: f32[2,2,128], index: 14, kind: output, shape index: {1}]  }
   0x1 LB: > { %s1022_s30 = sadd.s32 4294967295, %s1222_s29   ;;  %p1026_p0 = scmp.ge.s32.totalorder %s1222_s29, 1  ;;  %s1222_s29 = sphi %s1301_s29, %s25_s29  }
   0x2   : > { %p414_p1 = scmp.lt.s32.totalorder %s1222_s29, 3 }
   0x4   : > { %p415_p2 = pnand %p1026_p0, %p414_p1 }
   0x5   : > { %p462_p3 = scmp.lt.s32.totalorder (!%p415_p2), %s1022_s30, 1 }
   0x6   : > { %418 = sbr.rel (%p415_p2) target bundleno = 1078 (0x436), region = 72 }
   0xb   : > { %v490_v0 = vld [vmem:[%s1569_s1 + $0x78] sm:$0xff]  ;;  %v1224_v1 = vmov 0.0   ;;  %v489_v2 = vld [vmem:[%s1569_s1 + $0x70] sm:$0xff]  ;;  %vm1225_vm0 = vmmov 0   ;;  %v488_v3 = vld [vmem:[%s1569_s1 + $0x68] sm:$0xff]  ;;  %s1584_s30 = smov (!%p462_p3, %s1022_s30), 1  ;;  %v605_v50 = vlaneseq }
   0xc   : > { %1090 = vmatprep.subr.mxu0 %v1224_v1  ;;  %1122 = vmatprep.mubr.msk.f32.mxu0 %vm1225_vm0, %v1224_v1  ;;  %v487_v4 = vld [vmem:[%s1569_s1 + $0x60] sm:$0xff]  ;;  %v486_v5 = vld [vmem:[%s1569_s1 + $0x58] sm:$0xff]  ;;  %v485_v6 = vld [vmem:[%s1569_s1 + $0x50] sm:$0xff]  ;;  %s1369_s27 = sshll.u32 %s1584_s30, 1  ;;  %vm579_vm1 = vcmask 517120   ;;  %vm625_vm2 = vcmask 523264  }
   0xd   : > { %1091 = vmatpush3.msra.mxu0 %v490_v0  ;;  %1125 = vmatprep.subr.mxu1 %v1224_v1  ;;  %v484_v7 = vld [vmem:[%s1569_s1 + $0x48] sm:$0xff]  ;;  %v483_v8 = vld [vmem:[%s1569_s1 + $0x40] sm:$0xff]  ;;  %v482_v9 = vld [vmem:[%s1569_s1 + $0x38] sm:$0xff]  ;;  %s465_s20 = scalar_lea.vmem %s1568_s0, %s1369_s27  ;;  %v606_v51 = vshrl.u32 %v605_v50, 7  ;;  %vm922_vm3 = vcmask 1041408   ;;  %s469_s26 = scalar_lea.vmem %s1581_s13, %s1369_s27 }
   0xe   : > { %1092 = vmatprep.subr.mxu0 %v1224_v1  ;;  %1141 = vmatprep.mubr.msk.f32.mxu1 %vm1225_vm0, %v1224_v1  ;;  %v481_v10 = vld [vmem:[%s1569_s1 + $0x30] sm:$0xff]  ;;  %v480_v11 = vld [vmem:[%s1569_s1 + $0x28] sm:$0xff]  ;;  %v479_v12 = vld [vmem:[%s1569_s1 + $0x20] sm:$0xff]  ;;  %s473_s23 = scalar_lea.vmem %s1582_s14, %s1369_s27 }
   0xf   : > { %1093 = vmatpush3.msra.mxu0 %v489_v2  ;;  %v478_v13 = vld [vmem:[%s1569_s1 + $0x18] sm:$0xff]  ;;  %v477_v14 = vld [vmem:[%s1569_s1 + $0x10] sm:$0xff]  ;;  %v476_v15 = vld [vmem:[%s1569_s1 + $0x8] sm:$0xff]  ;;  %v1431_v53 = vsub.s32 0, %v606_v51 }
  0x10   : > { %1094 = vmatprep.subr.mxu0 %v1224_v1  ;;  %v475_v16 = vld [vmem:[%s1569_s1] sm:$0xff]  ;;  %v501_v18 = vld [vmem:[%s1573_s5 + $0x38] sm:$0xff]  ;;  %v500_v19 = vld [vmem:[%s1573_s5 + $0x30] sm:$0xff] }
  0x11   : > { %1095 = vmatpush3.msra.mxu0 %v488_v3  ;;  %v474_v17 = vld [vmem:[%s465_s20] sm:$0x3]  ;;  %1126 = vmatpush3.msra.mxu1 %v501_v18  ;;  %v499_v20 = vld [vmem:[%s1573_s5 + $0x28] sm:$0xff]  ;;  %v497_v22 = vld [vmem:[%s1573_s5 + $0x18] sm:$0xff] }
  0x12   : > { %1096 = vmatprep.subr.mxu0 %v1224_v1  ;;  %1127 = vmatprep.subr.mxu1 %v1224_v1  ;;  %v498_v21 = vld [vmem:[%s1573_s5 + $0x20] sm:$0xff]  ;;  %v496_v23 = vld [vmem:[%s1573_s5 + $0x10] sm:$0xff]  ;;  %v495_v24 = vld [vmem:[%s1573_s5 + $0x8] sm:$0xff] }
  0x13   : > { %1097 = vmatpush3.msra.mxu0 %v487_v4  ;;  %1128 = vmatpush3.msra.mxu1 %v500_v19  ;;  %v494_v25 = vld [vmem:[%s1573_s5] sm:$0xff]  ;;  %v714_v0 = vld [vmem:[%s1575_s7 + $0x78] sm:$0xff]  ;;  %v713_v2 = vld [vmem:[%s1575_s7 + $0x70] sm:$0xff] }
  0x14   : > { %1098 = vmatprep.subr.mxu0 %v1224_v1  ;;  %1129 = vmatprep.subr.mxu1 %v1224_v1  ;;  %v1030_v26 = vld [vmem:[%s1570_s2] ss:$0 sm:$0xff]  ;;  %v712_v3 = vld [vmem:[%s1575_s7 + $0x68] sm:$0xff] }
  0x15   : > { %1099 = vmatpush3.msra.mxu0 %v486_v5  ;;  %1130 = vmatpush3.msra.mxu1 %v499_v20  ;;  %v492_v52 = vld [vmem:[%s1571_s3] sm:$0x1]  ;;  %v710_v5 = vld [vmem:[%s1575_s7 + $0x58] sm:$0xff] }
  0x16   : > { %1100 = vmatprep.subr.mxu0 %v1224_v1  ;;  %1131 = vmatprep.subr.mxu1 %v1224_v1  ;;  %v493_v56 = vld [vmem:[%s1572_s4] sm:$0x1] }
  0x17   : > { %1101 = vmatpush3.msra.mxu0 %v485_v6  ;;  %1132 = vmatpush3.msra.mxu1 %v498_v21  ;;  %v711_v4 = vld [vmem:[%s1575_s7 + $0x60] sm:$0xff]  ;;  %v709_v6 = vld [vmem:[%s1575_s7 + $0x50] sm:$0xff] }
  0x18   : > { %1102 = vmatprep.subr.mxu0 %v1224_v1  ;;  %1133 = vmatprep.subr.mxu1 %v1224_v1 }
  0x19   : > { %1103 = vmatpush3.msra.mxu0 %v484_v7  ;;  %1134 = vmatpush3.msra.mxu1 %v497_v22  ;;  %v708_v7 = vld [vmem:[%s1575_s7 + $0x48] sm:$0xff] }
  0x1a   : > { %1104 = vmatprep.subr.mxu0 %v1224_v1  ;;  %1135 = vmatprep.subr.mxu1 %v1224_v1 }
  0x1b   : > { %1105 = vmatpush3.msra.mxu0 %v483_v8  ;;  %1136 = vmatpush3.msra.mxu1 %v496_v23  ;;  %v707_v8 = vld [vmem:[%s1575_s7 + $0x40] sm:$0xff]  ;;  %v725_v23 = vld [vmem:[%s1579_s11 + $0x38] sm:$0xff] }
  0x1c   : > { %1106 = vmatprep.subr.mxu0 %v1224_v1  ;;  %1137 = vmatprep.subr.mxu1 %v1224_v1 }
  0x1d   : > { %1107 = vmatpush3.msra.mxu0 %v482_v9  ;;  %1138 = vmatpush3.msra.mxu1 %v495_v24  ;;  %v706_v9 = vld [vmem:[%s1575_s7 + $0x38] sm:$0xff]  ;;  %v724_v24 = vld [vmem:[%s1579_s11 + $0x30] sm:$0xff] }
  0x1e   : > { %1108 = vmatprep.subr.mxu0 %v1224_v1  ;;  %1139 = vmatprep.subr.mxu1 %v1224_v1 }
  0x1f   : > { %1109 = vmatpush3.msra.mxu0 %v481_v10  ;;  %1140 = vmatpush3.msra.mxu1 %v494_v25  ;;  %v705_v10 = vld [vmem:[%s1575_s7 + $0x30] sm:$0xff]  ;;  %v723_v25 = vld [vmem:[%s1579_s11 + $0x28] sm:$0xff] }
  0x20   : > { %1110 = vmatprep.subr.mxu0 %v1224_v1  ;;  %1144 = vmatprep.subr.mxu1 %v1224_v1 }
  0x21   : > { %1111 = vmatpush3.msra.mxu0 %v480_v11  ;;  %v704_v11 = vld [vmem:[%s1575_s7 + $0x28] sm:$0xff] }
  0x22   : > { %1112 = vmatprep.subr.mxu0 %v1224_v1 }
  0x23   : > { %1113 = vmatpush3.msra.mxu0 %v479_v12  ;;  %v703_v12 = vld [vmem:[%s1575_s7 + $0x20] sm:$0xff] }
  0x24   : > { %1114 = vmatprep.subr.mxu0 %v1224_v1 }
  0x25   : > { %1115 = vmatpush3.msra.mxu0 %v478_v13  ;;  %v702_v13 = vld [vmem:[%s1575_s7 + $0x18] sm:$0xff] }
  0x26   : > { %1116 = vmatprep.subr.mxu0 %v1224_v1 }
  0x27   : > { %1117 = vmatpush3.msra.mxu0 %v477_v14  ;;  %v701_v14 = vld [vmem:[%s1575_s7 + $0x10] sm:$0xff] }
  0x28   : > { %1118 = vmatprep.subr.mxu0 %v1224_v1 }
  0x29   : > { %1119 = vmatpush3.msra.mxu0 %v476_v15  ;;  %v700_v15 = vld [vmem:[%s1575_s7 + $0x8] sm:$0xff] }
  0x2a   : > { %1120 = vmatprep.subr.mxu0 %v1224_v1 }
  0x2b   : > { %1121 = vmatpush3.msra.mxu0 %v475_v16  ;;  %v699_v16 = vld [vmem:[%s1575_s7] sm:$0xff] }
  0x2c   : > { %1123 = vmatmul.mubr.f32.vlgmr.msra.gmra.mxu0 %v474_v17  ;;  %1179 = vmatprep.subr.mxu0 %v1224_v1  ;;  %v1031_v17 = vld [vmem:[%s1574_s6] ss:$0 sm:$0xff] }
  0x2d   : > { %1195 = vmatprep.mubr.msk.f32.mxu0 %vm1225_vm0, %v1224_v1  ;;  %1180 = vmatpush3.msra.mxu0 %v725_v23 }
  0x2e   : > { %1181 = vmatprep.subr.mxu0 %v1224_v1 }
  0x2f   : > { %1182 = vmatpush3.msra.mxu0 %v724_v24 }
  0x30   : > { %1183 = vmatprep.subr.mxu0 %v1224_v1 }
  0x31   : > { %1184 = vmatpush3.msra.mxu0 %v723_v25 }
  0x32   : > { %1185 = vmatprep.subr.mxu0 %v1224_v1 }
  0xec   : > { %v575_v27 = vpop.f32.mrf.mxu0 }
  0xed   : > { %v576_v28 = vadd.f32 %v1030_v26, %v575_v27  ;;  %v722_v26 = vld [vmem:[%s1579_s11 + $0x20] sm:$0xff]  ;;  %v721_v27 = vld [vmem:[%s1579_s11 + $0x18] sm:$0xff] }
  0xee   : > { %v1124_v29 = vpop.f32.mrf.mxu0  ;;  %1186 = vmatpush3.msra.mxu0 %v722_v26 }
  0xef   : > { %v580_v30 = vsel %vm579_vm1, %v576_v28, 0.0  ;;  %v588_v31 = vmul.f32 %v576_v28, %v576_v28  ;;  %1187 = vmatprep.subr.mxu0 %v1224_v1  ;;  %v719_v29 = vld [vmem:[%s1579_s11 + $0x8] sm:$0xff] }
  0xf0   : > { %v581_v32 = vrot.slane %v580_v30, 4  ;;  %1188 = vmatpush3.msra.mxu0 %v721_v27 }
  0xf1   : > { %v589_v33 = vsel %vm579_vm1, %v588_v31, 0.0  ;;  %1189 = vmatprep.subr.mxu0 %v1224_v1 }
  0xf2   : > { %v582_v34 = vadd.f32 %v581_v32, %v580_v30  ;;  %v590_v35 = vrot.slane %v589_v33, 4  ;;  %v718_v30 = vld [vmem:[%s1579_s11] sm:$0xff] }
  0xf4   : > { %v583_v36 = vrot.slane %v582_v34, 2  ;;  %v591_v37 = vadd.f32 %v590_v35, %v589_v33  ;;  %v1033_v35 = vld [vmem:[%s1576_s8] ss:$0 sm:$0xff] }
  0xf6   : > { %v584_v38 = vadd.f32 %v583_v36, %v582_v34  ;;  %v592_v39 = vrot.slane %v591_v37, 2 }
  0xf8   : > { %v585_v40 = vrot.slane %v584_v38, 1  ;;  %v593_v41 = vadd.f32 %v592_v39, %v591_v37 }
  0xfa   : > { %v586_v42 = vadd.f32 %v585_v40, %v584_v38  ;;  %v594_v43 = vrot.slane %v593_v41, 1 }
  0xfc   : > { %v587_v44 = vmul.f32 0.5, %v586_v42  ;;  %v595_v45 = vadd.f32 %v594_v43, %v593_v41 }
  0xfe   : > { %v596_v46 = vmul.f32 0.5, %v595_v45  ;;  %v597_v47 = vmul.f32 %v587_v44, %v587_v44 }
 0x100   : > { %v598_v48 = vsub.f32 %v596_v46, %v597_v47 }
 0x102   : > { %v599_v49 = vadd.f32 1e-05, %v598_v48 }
 0x104   : > { %1208 = vrsqrt.f32 %v599_v49 }
 0x111   : > { %v1209_v54 = vpop.eup %1208 }
 0x112   : > { %v601_v55 = vmul.f32 %v1209_v54, %v492_v52 }
 0x114   : > { %v602_v57 = vmul.f32 %v601_v55, %v587_v44  ;;  %v608_v58 = vrot.slane %v601_v55, %v1431_v53 }
 0x116   : > { %v603_v59 = vsub.f32 %v493_v56, %v602_v57  ;;  %v610_v60 = vmul.f32 %v608_v58, %v576_v28  ;;  %v720_v28 = vld [vmem:[%s1579_s11 + $0x10] sm:$0xff] }
 0x117   : > { %1190 = vmatpush3.msra.mxu0 %v720_v28 }
 0x118   : > { %v615_v61 = vrot.slane %v603_v59, %v1431_v53  ;;  %1191 = vmatprep.subr.mxu0 %v1224_v1  ;;  %v716_v59 = vld [vmem:[%s1577_s9] sm:$0x1] }
 0x119   : > { %1192 = vmatpush3.msra.mxu0 %v719_v29 }
 0x11a   : > { %v617_v62 = vadd.f32 %v615_v61, %v610_v60  ;;  %1193 = vmatprep.subr.mxu0 %v1224_v1 }
 0x11b   : > { %1194 = vmatpush3.msra.mxu0 %v718_v30 }
 0x11c   : > { %v618_v63 = vmax.f32 %v617_v62, 0.0  ;;  %v717_v62 = vld [vmem:[%s1578_s10] sm:$0x1] }
 0x11e   : > { %1142 = vmatmul.mubr.msk.f32.vlgmr.msra.gmra.mxu1 %vm625_vm2, %v618_v63 }
 0x11f   : > { %1145 = vmatpush3.msra.mxu1 %v714_v0  ;;  %1176 = vmatprep.mubr.msk.f32.mxu1 %vm1225_vm0, %v1224_v1 }
 0x120   : > { %1146 = vmatprep.subr.mxu1 %v1224_v1 }
 0x121   : > { %1147 = vmatpush3.msra.mxu1 %v713_v2 }
 0x122   : > { %1148 = vmatprep.subr.mxu1 %v1224_v1 }
 0x123   : > { %1149 = vmatpush3.msra.mxu1 %v712_v3 }
 0x124   : > { %1150 = vmatprep.subr.mxu1 %v1224_v1 }
 0x125   : > { %1151 = vmatpush3.msra.mxu1 %v711_v4 }
 0x126   : > { %1152 = vmatprep.subr.mxu1 %v1224_v1 }
 0x127   : > { %1153 = vmatpush3.msra.mxu1 %v710_v5 }
 0x128   : > { %1154 = vmatprep.subr.mxu1 %v1224_v1 }
 0x129   : > { %1155 = vmatpush3.msra.mxu1 %v709_v6 }
 0x12a   : > { %1156 = vmatprep.subr.mxu1 %v1224_v1 }
 0x12b   : > { %1157 = vmatpush3.msra.mxu1 %v708_v7  ;;  %v1034_v7 = vld [vmem:[%s1580_s12] ss:$0 sm:$0xff] }
 0x12c   : > { %1158 = vmatprep.subr.mxu1 %v1224_v1 }
 0x12d   : > { %1159 = vmatpush3.msra.mxu1 %v707_v8 }
 0x12e   : > { %1160 = vmatprep.subr.mxu1 %v1224_v1 }
 0x12f   : > { %1161 = vmatpush3.msra.mxu1 %v706_v9 }
 0x130   : > { %1162 = vmatprep.subr.mxu1 %v1224_v1 }
 0x131   : > { %1163 = vmatpush3.msra.mxu1 %v705_v10 }
 0x132   : > { %1164 = vmatprep.subr.mxu1 %v1224_v1 }
 0x133   : > { %1165 = vmatpush3.msra.mxu1 %v704_v11 }
 0x134   : > { %1166 = vmatprep.subr.mxu1 %v1224_v1 }
 0x135   : > { %1167 = vmatpush3.msra.mxu1 %v703_v12 }
 0x136   : > { %1168 = vmatprep.subr.mxu1 %v1224_v1 }
 0x137   : > { %1169 = vmatpush3.msra.mxu1 %v702_v13 }
 0x138   : > { %1170 = vmatprep.subr.mxu1 %v1224_v1 }
 0x139   : > { %1171 = vmatpush3.msra.mxu1 %v701_v14 }
 0x13a   : > { %1172 = vmatprep.subr.mxu1 %v1224_v1 }
 0x13b   : > { %1173 = vmatpush3.msra.mxu1 %v700_v15 }
 0x13c   : > { %1174 = vmatprep.subr.mxu1 %v1224_v1 }
 0x13d   : > { %1175 = vmatpush3.msra.mxu1 %v699_v16 }
 0x1de   : > { %v695_v18 = vpop.f32.mrf.mxu1 }
 0x1df   : > { %v696_v19 = vadd.f32 %v1031_v17, %v695_v18 }
 0x1e0   : > { %v1143_v20 = vpop.f32.mrf.mxu1 }
 0x1e1   : > { %1177 = vmatmul.mubr.f32.vlgmr.msra.gmra.mxu1 %v696_v19  ;;  %v921_v21 = vmul.f32 %v696_v19, %v696_v19 }
 0x1e3   : > { %v923_v22 = vsel %vm922_vm3, %v921_v21, 0.0 }
 0x1e4   : > { %924 = vadd.xlane.f32.xlu0 %v923_v22 }
 0x26d   : > { %v925_v31 = vpop.xlane.xlu0 %924 }
 0x26e   : > { %v926_v32 = vmax.f32 %v925_v31, 1e-24 }
 0x270   : > { %1210 = vrsqrt.f32 %v926_v32 }
 0x27d   : > { %v1211_v33 = vpop.eup %1210 }
 0x27e   : > { %v928_v34 = vmul.f32 %v1211_v33, %v696_v19 }
 0x280   : > { %929 = vst [vmem:[%s469_s26] sm:$0x3] %v928_v34 }
 0x2a1   : > { %v799_v1 = vpop.f32.mrf.mxu1 }
 0x2a2   : > { %v800_v36 = vadd.f32 %v1033_v35, %v799_v1 }
 0x2a3   : > { %v1178_v37 = vpop.f32.mrf.mxu1 }
 0x2a4   : > { %v803_v38 = vsel %vm579_vm1, %v800_v36, 0.0  ;;  %v811_v39 = vmul.f32 %v800_v36, %v800_v36 }
 0x2a5   : > { %v804_v40 = vrot.slane %v803_v38, 4 }
 0x2a6   : > { %v812_v41 = vsel %vm579_vm1, %v811_v39, 0.0 }
 0x2a7   : > { %v805_v42 = vadd.f32 %v804_v40, %v803_v38  ;;  %v813_v43 = vrot.slane %v812_v41, 4 }
 0x2a9   : > { %v806_v44 = vrot.slane %v805_v42, 2  ;;  %v814_v45 = vadd.f32 %v813_v43, %v812_v41 }
 0x2ab   : > { %v807_v46 = vadd.f32 %v806_v44, %v805_v42  ;;  %v815_v47 = vrot.slane %v814_v45, 2 }
 0x2ad   : > { %v808_v48 = vrot.slane %v807_v46, 1  ;;  %v816_v49 = vadd.f32 %v815_v47, %v814_v45 }
 0x2af   : > { %v809_v50 = vadd.f32 %v808_v48, %v807_v46  ;;  %v817_v51 = vrot.slane %v816_v49, 1 }
 0x2b1   : > { %v810_v52 = vmul.f32 0.5, %v809_v50  ;;  %v818_v54 = vadd.f32 %v817_v51, %v816_v49 }
 0x2b3   : > { %v819_v55 = vmul.f32 0.5, %v818_v54  ;;  %v820_v56 = vmul.f32 %v810_v52, %v810_v52 }
 0x2b5   : > { %v821_v57 = vsub.f32 %v819_v55, %v820_v56 }
 0x2b7   : > { %v822_v58 = vadd.f32 1e-05, %v821_v57 }
 0x2b9   : > { %1212 = vrsqrt.f32 %v822_v58 }
 0x2c6   : > { %v1213_v60 = vpop.eup %1212 }
 0x2c7   : > { %v824_v61 = vmul.f32 %v1213_v60, %v716_v59 }
 0x2c9   : > { %v825_v63 = vmul.f32 %v824_v61, %v810_v52  ;;  %v831_v0 = vrot.slane %v824_v61, %v1431_v53 }
 0x2cb   : > { %v826_v2 = vsub.f32 %v717_v62, %v825_v63  ;;  %v833_v3 = vmul.f32 %v831_v0, %v800_v36 }
 0x2cd   : > { %v838_v4 = vrot.slane %v826_v2, %v1431_v53 }
 0x2cf   : > { %v840_v5 = vadd.f32 %v838_v4, %v833_v3 }
 0x2d1   : > { %v841_v6 = vmax.f32 %v840_v5, 0.0 }
 0x2d3   : > { %1196 = vmatmul.mubr.msk.f32.vlgmr.msra.gmra.mxu0 %vm625_vm2, %v841_v6 }
 0x393   : > { %v917_v8 = vpop.f32.mrf.mxu0 }
 0x394   : > { %v918_v9 = vadd.f32 %v1034_v7, %v917_v8 }
 0x395   : > { %v1197_v10 = vpop.f32.mrf.mxu0 }
 0x396   : > { %v930_v11 = vmul.f32 %v918_v9, %v918_v9 }
 0x398   : > { %v931_v12 = vsel %vm922_vm3, %v930_v11, 0.0 }
 0x399   : > { %932 = vadd.xlane.f32.xlu0 %v931_v12 }
 0x422   : > { %v933_v13 = vpop.xlane.xlu0 %932 }
 0x423   : > { %v934_v14 = vmax.f32 %v933_v13, 1e-24 }
 0x425   : > { %1214 = vrsqrt.f32 %v934_v14 }
 0x432   : > { %v1215_v15 = vpop.eup %1214 }
 0x433   : > { %v936_v53 = vmul.f32 %v1215_v15, %v918_v9 }
 0x435   : > { %937 = vst [vmem:[%s473_s23] sm:$0x3] %v936_v53 }
 0x436 PF: > { %s25_s29 = sadd.s32 1, %s1222_s29  }
 0x437   : > { %p22_p4 = scmp.ge.s32.totalorder %s25_s29, 4  }
 0x439   :  { %24 = sbr.rel (!%p22_p4) target bundleno = 1 (0x1), region = 114 }

// kernel: byol_forward.2
= control target key start
LH: loop header
LB: loop body
LE: loop exit
PB: predicated region body
PF: predicated region fallthrough
CT: control target
= control target key end

     0   :  { %s2987_s19 = smov 15   ;;  %s2988_s20 = smov 16   ;;  %v65_v16 = vlaneseq  ;;  %vm779_vm5 = vcmask 1042432   ;;  %vm788_vm6 = vcmask 1045504   ;;  %vm797_vm7 = vcmask 1040384   ;;  %s4252_s0 = inlined_call_operand.vmem [shape: f32[1,3,1024], index: 0, kind: input, shape index: {}]   ;;  %s4253_s1 = inlined_call_operand.vmem [shape: f32[9,1024], index: 1, kind: input, shape index: {}]   ;;  %s4254_s2 = inlined_call_operand.vmem [shape: f32[32,128], index: 2, kind: input, shape index: {}]   ;;  %s4255_s3 = inlined_call_operand.vmem [shape: f32[1,128], index: 3, kind: input, shape index: {}]   ;;  %s4256_s4 = inlined_call_operand.vmem [shape: f32[4,128], index: 4, kind: output, shape index: {}]  }
   0x1   :  { %v3023_v0 = vld [vmem:[%s4252_s0] sm:$0x77]  ;;  %v3028_v1 = vld [vmem:[%s4252_s0 + $0x18] sm:$0x77]  ;;  %s2989_s21 = smov 1   ;;  %s2990_s24 = smov 17  }
   0x2   :  { %181 = vrot.lane.b32.xlu1 %v3023_v0, %s2987_s19  ;;  %116 = vrot.lane.b32.xlu0 %v3023_v0, %s2988_s20  ;;  %v3036_v2 = vcombine.high %v3028_v1, %v3028_v1  ;;  %v3049_v3 = vld [vmem:[%s4252_s0 + $0x8] sm:$0x77]  ;;  %v3062_v5 = vld [vmem:[%s4252_s0 + $0x10] sm:$0x77]  ;;  %v41_v6 = vcombine.high %v3023_v0, %v3023_v0  ;;  %s2991_s0 = smov 127   ;;  %s2992_s27 = smov 113  }
   0x3   :  { %v3057_v4 = vcombine.high %v3049_v3, %v3049_v3  ;;  %v43_v7 = vcombine.high %v3062_v5, %v3062_v5  ;;  %s2993_s28 = smov 112   ;;  %s2994_s29 = smov 111   ;;  %v3184_v19 = vshrl.u32 %v65_v16, 7  ;;  %v3186_v20 = vand.u32 127, %v65_v16  ;;  %v3201_v25 = vld [vmem:[%s4253_s1 + $0x8] sm:$0xff]  ;;  %v3206_v26 = vld [vmem:[%s4253_s1] sm:$0xff] }
   0x4   :  { %v3266_v50 = vld [vmem:[%s4253_s1 + $0x20] sm:$0xff]  ;;  %v3285_v57 = vld [vmem:[%s4253_s1 + $0x28] sm:$0xff]  ;;  %vm806_vm8 = vcmask 1043456   ;;  %vm815_vm10 = vcmask 1046528   ;;  %vm824_vm12 = vcmask 1041408   ;;  %vm833_vm13 = vcmask 1044480  }
   0x5   :  { %v3193_v23 = vsub.s32 4, %v3184_v19  ;;  %v3196_v24 = vsub.s32 1, %v3184_v19  ;;  %v3209_v27 = vsub.s32 3, %v3184_v19  ;;  %vm132_vm0 = vcmp.lt.s32.totalorder %v3186_v20, 16 }
   0x6   :  { %195 = vrot.lane.b32.xlu1 %v3036_v2, %s2987_s19  ;;  %130 = vrot.lane.b32.xlu0 %v3036_v2, %s2988_s20  ;;  %v3213_v28 = vsub.s32 0, %v3184_v19  ;;  %v3220_v31 = vsub.s32 2, %v3184_v19  ;;  %vm262_vm1 = vcmp.lt.s32.totalorder %v3186_v20, 1  ;;  %vm67_vm2 = vcmp.lt.s32.totalorder %v3186_v20, 17 }
   0x7   :  { %v314_v32 = vrot.slane %v3206_v26, %v3193_v23  ;;  %v318_v33 = vrot.slane %v3201_v25, %v3193_v23  ;;  %v144_v34 = vrot.slane %v3206_v26, %v3196_v24  ;;  %vm197_vm3 = vcmp.lt.s32.totalorder %v3186_v20, 15 }
   0x8   :  { %v274_v36 = vrot.slane %v3206_v26, %v3209_v27  ;;  %v3238_v37 = vsub.s32 5, %v3184_v19  ;;  %v79_v39 = vrot.slane %v3206_v26, %v3213_v28  ;;  %v209_v42 = vrot.slane %v3206_v26, %v3220_v31 }
   0x9   :  { %vm379_vm4 = vcmp.lt.s32.totalorder %v3186_v20, 127  ;;  %v351_v44 = vcombine.low %v314_v32, %v318_v33  ;;  %v3277_v55 = vsub.s32 6, %v3184_v19  ;;  %v160_v60 = vrot.slane %v3266_v50, %v3196_v24 }
   0xa   :  { %260 = vrot.lane.b32.xlu1 %v3036_v2, %s2989_s21  ;;  %246 = vrot.lane.b32.xlu0 %v3023_v0, %s2989_s21  ;;  %v391_v48 = vrot.slane %v3206_v26, %v3238_v37  ;;  %vm444_vm9 = vcmp.lt.s32.totalorder %v3186_v20, 113  ;;  %v225_v62 = vrot.slane %v3266_v50, %v3220_v31  ;;  %v290_v16 = vrot.slane %v3266_v50, %v3209_v27 }
   0xb   :  { %v3280_v56 = vmul.f32 %v351_v44, %v3023_v0  ;;  %v456_v32 = vrot.slane %v3206_v26, %v3277_v55  ;;  %vm509_vm11 = vcmp.lt.s32.totalorder %v3186_v20, 112  ;;  %vm574_vm14 = vcmp.lt.s32.totalorder %v3186_v20, 111 }
   0xc   :  { %vm1117_vm15 = vcmask 261120  }
   0xd   :  { %v699_v33 = vcombine.low %v3280_v56, %v3280_v56 }
   0xe   :  { %63 = vrot.lane.b32.xlu1 %v3036_v2, %s2990_s24  ;;  %49 = vrot.lane.b32.xlu0 %v3023_v0, %s2990_s24 }
  0x12   :  { %124 = vrot.lane.b32.xlu1 %v3062_v5, %s2988_s20  ;;  %122 = vrot.lane.b32.xlu0 %v3057_v4, %s2988_s20 }
  0x16   :  { %189 = vrot.lane.b32.xlu1 %v3062_v5, %s2987_s19  ;;  %187 = vrot.lane.b32.xlu0 %v3057_v4, %s2987_s19 }
  0x1a   :  { %254 = vrot.lane.b32.xlu1 %v3062_v5, %s2989_s21  ;;  %252 = vrot.lane.b32.xlu0 %v3057_v4, %s2989_s21 }
  0x1e   :  { %363 = vrot.lane.b32.xlu0 %v3023_v0, %s2991_s0  ;;  %365 = vrot.lane.b32.xlu1 %v41_v6, %s2991_s0 }
  0x22   :  { %55 = vrot.lane.b32.xlu0 %v3057_v4, %s2990_s24  ;;  %57 = vrot.lane.b32.xlu1 %v3062_v5, %s2990_s24 }
  0x26   :  { %428 = vrot.lane.b32.xlu0 %v3023_v0, %s2992_s27  ;;  %430 = vrot.lane.b32.xlu1 %v41_v6, %s2992_s27 }
  0x2a   :  { %371 = vrot.lane.b32.xlu0 %v3062_v5, %s2991_s0  ;;  %373 = vrot.lane.b32.xlu1 %v43_v7, %s2991_s0 }
  0x2e   :  { %493 = vrot.lane.b32.xlu0 %v3023_v0, %s2993_s28  ;;  %495 = vrot.lane.b32.xlu1 %v41_v6, %s2993_s28 }
  0x32   :  { %436 = vrot.lane.b32.xlu0 %v3062_v5, %s2992_s27  ;;  %438 = vrot.lane.b32.xlu1 %v43_v7, %s2992_s27 }
  0x36   :  { %501 = vrot.lane.b32.xlu0 %v3062_v5, %s2993_s28  ;;  %503 = vrot.lane.b32.xlu1 %v43_v7, %s2993_s28 }
  0x3a   :  { %558 = vrot.lane.b32.xlu0 %v3023_v0, %s2994_s29  ;;  %560 = vrot.lane.b32.xlu1 %v41_v6, %s2994_s29 }
  0x3e   :  { %566 = vrot.lane.b32.xlu0 %v3062_v5, %s2994_s29  ;;  %568 = vrot.lane.b32.xlu1 %v43_v7, %s2994_s29 }
  0x42   :  { %118 = vrot.lane.b32.xlu0 %v41_v6, %s2988_s20  ;;  %183 = vrot.lane.b32.xlu1 %v41_v6, %s2987_s19 }
  0x46   :  { %248 = vrot.lane.b32.xlu0 %v41_v6, %s2989_s21  ;;  %51 = vrot.lane.b32.xlu1 %v41_v6, %s2990_s24  ;;  %v334_v6 = vrot.slane %v3285_v57, %v3193_v23 }
  0x4a   :  { %126 = vrot.lane.b32.xlu0 %v43_v7, %s2988_s20  ;;  %191 = vrot.lane.b32.xlu1 %v43_v7, %s2987_s19 }
  0x4e   :  { %256 = vrot.lane.b32.xlu0 %v43_v7, %s2989_s21  ;;  %367 = vrot.lane.b32.xlu1 %v3049_v3, %s2991_s0 }
  0x52   :  { %59 = vrot.lane.b32.xlu0 %v43_v7, %s2990_s24  ;;  %432 = vrot.lane.b32.xlu1 %v3049_v3, %s2992_s27 }
  0x56   :  { %375 = vrot.lane.b32.xlu0 %v3028_v1, %s2991_s0  ;;  %497 = vrot.lane.b32.xlu1 %v3049_v3, %s2993_s28 }
  0x5a   :  { %440 = vrot.lane.b32.xlu0 %v3028_v1, %s2992_s27  ;;  %505 = vrot.lane.b32.xlu1 %v3028_v1, %s2993_s28 }
  0x5e   :  { %562 = vrot.lane.b32.xlu0 %v3049_v3, %s2994_s29  ;;  %570 = vrot.lane.b32.xlu1 %v3028_v1, %s2994_s29 }
  0x62   :  { %120 = vrot.lane.b32.xlu0 %v3049_v3, %s2988_s20  ;;  %185 = vrot.lane.b32.xlu1 %v3049_v3, %s2987_s19 }
  0x66   :  { %250 = vrot.lane.b32.xlu0 %v3049_v3, %s2989_s21  ;;  %53 = vrot.lane.b32.xlu1 %v3049_v3, %s2990_s24 }
  0x6a   :  { %128 = vrot.lane.b32.xlu0 %v3028_v1, %s2988_s20  ;;  %193 = vrot.lane.b32.xlu1 %v3028_v1, %s2987_s19 }
  0x6e   :  { %258 = vrot.lane.b32.xlu0 %v3028_v1, %s2989_s21  ;;  %369 = vrot.lane.b32.xlu1 %v3057_v4, %s2991_s0 }
  0x72   :  { %61 = vrot.lane.b32.xlu0 %v3028_v1, %s2990_s24  ;;  %434 = vrot.lane.b32.xlu1 %v3057_v4, %s2992_s27 }
  0x74   :  { %v3152_v8 = vpop.permute.xlu1 %181  ;;  %v3154_v9 = vpop.permute.xlu0 %116 }
  0x76   :  { %377 = vrot.lane.b32.xlu0 %v3036_v2, %s2991_s0  ;;  %499 = vrot.lane.b32.xlu1 %v3057_v4, %s2993_s28 }
  0x78   :  { %v3160_v10 = vpop.permute.xlu1 %195  ;;  %v3162_v11 = vpop.permute.xlu0 %130 }
  0x79   :  { %v140_v35 = vsel %vm132_vm0, %v3162_v11, %v3154_v9  ;;  %v205_v45 = vsel %vm197_vm3, %v3160_v10, %v3152_v8 }
  0x7a   :  { %442 = vrot.lane.b32.xlu0 %v3036_v2, %s2992_s27  ;;  %507 = vrot.lane.b32.xlu1 %v3036_v2, %s2993_s28  ;;  %v173_v46 = vmul.f32 %v144_v34, %v140_v35  ;;  %v238_v54 = vmul.f32 %v209_v42, %v205_v45  ;;  %v95_v42 = vrot.slane %v3266_v50, %v3213_v28 }
  0x7c   :  { %v3168_v12 = vpop.permute.xlu1 %260  ;;  %v3170_v13 = vpop.permute.xlu0 %246  ;;  %v631_v58 = vrot.slane %v173_v46, 5  ;;  %v655_v7 = vrot.slane %v238_v54, 2 }
  0x7d   :  { %v270_v38 = vsel %vm262_vm1, %v3168_v12, %v3170_v13 }
  0x7e   :  { %572 = vrot.lane.b32.xlu0 %v3036_v2, %s2994_s29  ;;  %564 = vrot.lane.b32.xlu1 %v3057_v4, %s2994_s29  ;;  %v303_v47 = vmul.f32 %v274_v36, %v270_v38  ;;  %v330_v4 = vrot.slane %v3266_v50, %v3193_v23  ;;  %v3322_v38 = vsub.s32 7, %v3184_v19 }
  0x80   :  { %v3176_v14 = vpop.permute.xlu1 %63  ;;  %v3178_v15 = vpop.permute.xlu0 %49  ;;  %v679_v59 = vrot.slane %v303_v47, 7 }
  0x81   :  { %v75_v43 = vsel %vm67_vm2, %v3176_v14, %v3178_v15 }
  0x82   :  { %v108_v49 = vmul.f32 %v79_v39, %v75_v43  ;;  %v798_v44 = vsel %vm797_vm7, %v655_v7, %v679_v59 }
  0x83   :  { %v807_v59 = vsel %vm806_vm8, %v798_v44, %v699_v33 }
  0x84   :  { %v3180_v17 = vpop.permute.xlu1 %124  ;;  %v3182_v18 = vpop.permute.xlu0 %122  ;;  %v780_v2 = vsel %vm779_vm5, %v108_v49, %v631_v58  ;;  %v407_v58 = vrot.slane %v3266_v50, %v3238_v37 }
  0x85   :  { %v136_v34 = vsel %vm132_vm0, %v3182_v18, %v3180_v17  ;;  %v789_v43 = vsel %vm788_vm6, %v780_v2, %v655_v7 }
  0x86   :  { %v177_v49 = vmul.f32 %v160_v60, %v136_v34 }
  0x88   :  { %v3188_v21 = vpop.permute.xlu1 %189  ;;  %v3190_v22 = vpop.permute.xlu0 %187  ;;  %v635_v33 = vrot.slane %v177_v49, 5 }
  0x89   :  { %v201_v45 = vsel %vm197_vm3, %v3190_v22, %v3188_v21 }
  0x8a   :  { %v242_v2 = vmul.f32 %v225_v62, %v201_v45  ;;  %v852_v45 = vld [vmem:[%s4254_s2 + $0x10] sm:$0xff] }
  0x8c   :  { %v3215_v29 = vpop.permute.xlu1 %254  ;;  %v3217_v30 = vpop.permute.xlu0 %252 }
  0x8d   :  { %v266_v35 = vsel %vm262_vm1, %v3217_v30, %v3215_v29 }
  0x90   :  { %v3246_v40 = vpop.permute.xlu0 %363  ;;  %v3248_v41 = vpop.permute.xlu1 %365 }
  0x91   :  { %4266 = vst [vmem:[#allocation2_spill] sm:$0xff] %v3246_v40  ;;  %v386_v51 = vsel %vm379_vm4, %v3246_v40, %v3248_v41 }
  0x92   :  { %v3289_v61 = vmul.f32 %v391_v48, %v386_v51  ;;  %v353_v48 = vcombine.low %v330_v4, %v334_v6  ;;  %v307_v51 = vmul.f32 %v290_v16, %v266_v35 }
  0x94   :  { %v3272_v52 = vpop.permute.xlu0 %55  ;;  %v3274_v53 = vpop.permute.xlu1 %57  ;;  %v715_v39 = vrot.slane %v3289_v61, 1  ;;  %v521_v61 = vrot.slane %v3206_v26, %v3322_v38  ;;  %v683_v34 = vrot.slane %v307_v51, 7  ;;  %v537_v51 = vrot.slane %v3266_v50, %v3322_v38 }
  0x95   :  { %v71_v19 = vsel %vm67_vm2, %v3272_v52, %v3274_v53 }
  0x96   :  { %v112_v7 = vmul.f32 %v95_v42, %v71_v19  ;;  %v816_v60 = vsel %vm815_vm10, %v807_v59, %v715_v39  ;;  %v472_v42 = vrot.slane %v3266_v50, %v3277_v55  ;;  %v851_v50 = vld [vmem:[%s4254_s2 + $0x8] sm:$0xff] }
  0x98   :  { %v3294_v63 = vpop.permute.xlu0 %428  ;;  %v3296_v0 = vpop.permute.xlu1 %430  ;;  %v784_v44 = vsel %vm779_vm5, %v112_v7, %v635_v33 }
  0x99   :  { %4267 = vst [vmem:[#allocation3_spill] sm:$0xff] %v3294_v63  ;;  %v451_v36 = vsel %vm444_vm9, %v3294_v63, %v3296_v0 }
  0x9a   :  { %v485_v54 = vmul.f32 %v456_v32, %v451_v36  ;;  %v3357_v32 = vmul.f32 %v353_v48, %v3062_v5  ;;  %v659_v5 = vrot.slane %v242_v2, 2 }
  0x9c   :  { %v3337_v46 = vpop.permute.xlu0 %371  ;;  %861 = vxpose.xlu0.b32.start [1/4] (short) %v789_v43, 128  ;;  %v3339_v47 = vpop.permute.xlu1 %373  ;;  %v739_v26 = vrot.slane %v485_v54, 6  ;;  %v853_v43 = vld [vmem:[%s4254_s2 + $0x18] sm:$0xff]  ;;  %v701_v54 = vcombine.low %v3357_v32, %v3357_v32 }
  0x9d   :  { %v382_v4 = vsel %vm379_vm4, %v3337_v46, %v3339_v47  ;;  %2765 = vmatprep.subr.mxu0 %v853_v43  ;;  %2965 = vmatprep.subr.mxu1 %v853_v43 }
  0x9e   :  { %v424_v35 = vmul.f32 %v407_v58, %v382_v4  ;;  %2766 = vmatpush3.msra.mxu0 %v853_v43  ;;  %2969 = vmatpush3.msra.mxu1 %v853_v43  ;;  %v825_v59 = vsel %vm824_vm12, %v715_v39, %v739_v26  ;;  %v793_v4 = vsel %vm788_vm6, %v784_v44, %v659_v5  ;;  %v850_v39 = vld [vmem:[%s4254_s2] sm:$0xff] }
  0x9f   :  { %2767 = vmatprep.subr.mxu0 %v852_v45  ;;  %2966 = vmatprep.subr.mxu1 %v852_v45  ;;  %v2496_v43 = vld [vmem:[%s4253_s1 + $0x40] ss:$0 sm:$0xff] }
  0xa0   :  { %v3352_v6 = vpop.permute.xlu0 %493  ;;  %862 = vxpose.xlu0.b32.cont [2/4] (short) %v816_v60, 128  ;;  %v3354_v16 = vpop.permute.xlu1 %495  ;;  %v719_v2 = vrot.slane %v424_v35, 1  ;;  %2768 = vmatpush3.msra.mxu0 %v852_v45 }
  0xa1   :  { %4268 = vst [vmem:[#allocation4_spill] sm:$0xff] %v3352_v6  ;;  %v516_v62 = vsel %vm509_vm11, %v3352_v6, %v3354_v16  ;;  %2970 = vmatpush3.msra.mxu1 %v852_v45  ;;  %2769 = vmatprep.subr.mxu0 %v851_v50 }
  0xa2   :  { %v550_v36 = vmul.f32 %v521_v61, %v516_v62  ;;  %v802_v61 = vsel %vm797_vm7, %v659_v5, %v683_v34  ;;  %2967 = vmatprep.subr.mxu1 %v851_v50  ;;  %2770 = vmatpush3.msra.mxu0 %v851_v50 }
  0xa3   :  { %v811_v35 = vsel %vm806_vm8, %v802_v61, %v701_v54  ;;  %2971 = vmatpush3.msra.mxu1 %v851_v50  ;;  %2771 = vmatprep.subr.mxu0 %v850_v39 }
  0xa4   :  { %v763_v19 = vrot.slane %v550_v36, 3  ;;  %v3372_v48 = vpop.permute.xlu0 %436  ;;  %v3374_v49 = vpop.permute.xlu1 %438  ;;  %2968 = vmatprep.subr.mxu1 %v850_v39  ;;  %2772 = vmatpush3.msra.mxu0 %v850_v39 }
  0xa5   :  { %4269 = vst [vmem:[#allocation5_spill] sm:$0xff] %v3372_v48  ;;  %v447_v58 = vsel %vm444_vm9, %v3372_v48, %v3374_v49  ;;  %2972 = vmatpush3.msra.mxu1 %v850_v39  ;;  %v213_v39 = vrot.slane %v3201_v25, %v3220_v31 }
  0xa6   :  { %v489_v7 = vmul.f32 %v472_v42, %v447_v58  ;;  %v834_v60 = vsel %vm833_vm13, %v825_v59, %v763_v19  ;;  %v820_v42 = vsel %vm815_vm10, %v811_v35, %v719_v2  ;;  %v2500_v59 = vld [vmem:[%s4253_s1 + $0x60] ss:$0 sm:$0xff] }
  0xa7   :  { %989 = vxpose.xlu1.b32.start [1/4] (short) %v793_v4, 128  ;;  %863 = vxpose.xlu0.b32.cont [3/4] (short) %v834_v60, 128  ;;  %v148_v60 = vrot.slane %v3201_v25, %v3196_v24 }
  0xa8   :  { %v3394_v33 = vpop.permute.xlu0 %501  ;;  %v3396_v34 = vpop.permute.xlu1 %503  ;;  %v743_v26 = vrot.slane %v489_v7, 6 }
  0xa9   :  { %4270 = vst [vmem:[#allocation6_spill] sm:$0xff] %v3394_v33  ;;  %v512_v62 = vsel %vm509_vm11, %v3394_v33, %v3396_v34 }
  0xaa   :  { %v554_v36 = vmul.f32 %v537_v51, %v512_v62  ;;  %v829_v51 = vsel %vm824_vm12, %v719_v2, %v743_v26 }
  0xab   :  { %990 = vxpose.xlu1.b32.cont [2/4] (short) %v820_v42, 128 }
  0xac   :  { %v767_v5 = vrot.slane %v554_v36, 3  ;;  %v3408_v44 = vpop.permute.xlu0 %558  ;;  %v3410_v45 = vpop.permute.xlu1 %560 }
  0xad   :  { %4271 = vst [vmem:[#allocation7_spill] sm:$0xff] %v3408_v44  ;;  %v581_v19 = vsel %vm574_vm14, %v3408_v44, %v3410_v45 }
  0xae   :  { %v838_v54 = vsel %vm833_vm13, %v829_v51, %v767_v5  ;;  %v615_v58 = vmul.f32 %v2496_v43, %v581_v19  ;;  %v278_v19 = vrot.slane %v3201_v25, %v3209_v27  ;;  %v83_v51 = vrot.slane %v3201_v25, %v3213_v28 }
  0xaf   :  { %991 = vxpose.xlu1.b32.cont [3/4] (short) %v838_v54, 128 }
  0xb0   :  { %v3421_v61 = vpop.permute.xlu0 %566  ;;  %v3423_v50 = vpop.permute.xlu1 %568  ;;  %v842_v7 = vsel %vm779_vm5, %v615_v58, 0.0 }
  0xb1   :  { %4272 = vst [vmem:[#allocation8_spill] sm:$0xff] %v3421_v61  ;;  %v577_v4 = vsel %vm574_vm14, %v3421_v61, %v3423_v50  ;;  %864 = vxpose.xlu0.b32.end [4/4] (short) %v842_v7, 128 }
  0xb2   :  { %v619_v2 = vmul.f32 %v2500_v59, %v577_v4 }
  0xb4   :  { %v3434_v26 = vpop.permute.xlu0 %118  ;;  %v3436_v62 = vpop.permute.xlu1 %183  ;;  %v846_v35 = vsel %vm779_vm5, %v619_v2, 0.0 }
  0xb5   :  { %v139_v36 = vsel %vm132_vm0, %v3154_v9, %v3434_v26  ;;  %v204_v42 = vsel %vm197_vm3, %v3152_v8, %v3436_v62  ;;  %992 = vxpose.xlu1.b32.end [4/4] (short) %v846_v35, 128  ;;  %v229_v35 = vrot.slane %v3285_v57, %v3220_v31 }
  0xb6   :  { %v174_v43 = vmul.f32 %v148_v60, %v139_v36  ;;  %v239_v5 = vmul.f32 %v213_v39, %v204_v42 }
  0xb8   :  { %v3451_v54 = vpop.permute.xlu0 %248  ;;  %v3453_v58 = vpop.permute.xlu1 %51  ;;  %v632_v59 = vrot.slane %v174_v43, 5  ;;  %v656_v2 = vrot.slane %v239_v5, 2 }
  0xb9   :  { %v269_v9 = vsel %vm262_vm1, %v3170_v13, %v3451_v54  ;;  %v74_v8 = vsel %vm67_vm2, %v3178_v15, %v3453_v58  ;;  %v164_v13 = vrot.slane %v3285_v57, %v3196_v24 }
  0xba   :  { %v304_v7 = vmul.f32 %v278_v19, %v269_v9  ;;  %v109_v4 = vmul.f32 %v83_v51, %v74_v8  ;;  %v294_v19 = vrot.slane %v3285_v57, %v3209_v27  ;;  %v395_v51 = vrot.slane %v3201_v25, %v3238_v37 }
  0xbc   :  { %v680_v60 = vrot.slane %v304_v7, 7  ;;  %v3463_v39 = vpop.permute.xlu0 %126  ;;  %v3467_v36 = vpop.permute.xlu1 %191  ;;  %v781_v42 = vsel %vm779_vm5, %v109_v4, %v632_v59 }
  0xbd   :  { %v135_v15 = vsel %vm132_vm0, %v3180_v17, %v3463_v39  ;;  %v200_v43 = vsel %vm197_vm3, %v3188_v21, %v3467_v36  ;;  %v3481_v5 = vsel %vm788_vm6, %v781_v42, %v656_v2 }
  0xbe   :  { %4273 = vst [vmem:[#allocation9_spill] sm:$0xff] %v3481_v5  ;;  %v799_v9 = vsel %vm797_vm7, %v656_v2, %v680_v60  ;;  %v243_v8 = vmul.f32 %v229_v35, %v200_v43  ;;  %v178_v7 = vmul.f32 %v164_v13, %v135_v15  ;;  %v99_v2 = vrot.slane %v3285_v57, %v3213_v28  ;;  %v3507_v35 = vld [vmem:[%s4253_s1 + $0x10] sm:$0xff] }
  0xbf   :  { %v460_v60 = vrot.slane %v3201_v25, %v3277_v55  ;;  %v525_v13 = vrot.slane %v3201_v25, %v3322_v38  ;;  %v322_v15 = vrot.slane %v3507_v35, %v3193_v23 }
  0xc0   :  { %v3488_v59 = vpop.permute.xlu0 %256  ;;  %v3490_v17 = vpop.permute.xlu1 %367  ;;  %v660_v43 = vrot.slane %v243_v8, 2  ;;  %v636_v6 = vrot.slane %v178_v7, 5 }
  0xc1   :  { %v265_v21 = vsel %vm262_vm1, %v3215_v29, %v3488_v59  ;;  %v385_v4 = vsel %vm379_vm4, %v3248_v41, %v3490_v17  ;;  %v411_v29 = vrot.slane %v3285_v57, %v3238_v37  ;;  %v3516_v41 = vld [vmem:[%s4253_s1 + $0x18] sm:$0xff] }
  0xc2   :  { %v308_v42 = vmul.f32 %v294_v19, %v265_v21  ;;  %v421_v44 = vmul.f32 %v395_v51, %v385_v4  ;;  %v326_v61 = vrot.slane %v3516_v41, %v3193_v23 }
  0xc4   :  { %v684_v19 = vrot.slane %v308_v42, 7  ;;  %v716_v51 = vrot.slane %v421_v44, 1  ;;  %v3520_v21 = vpop.permute.xlu0 %59  ;;  %v3522_v4 = vpop.permute.xlu1 %432  ;;  %v808_v44 = vsel %vm806_vm8, %v799_v9, %v3280_v56 }
  0xc5   :  { %v70_v25 = vsel %vm67_vm2, %v3274_v53, %v3520_v21  ;;  %v450_v8 = vsel %vm444_vm9, %v3296_v0, %v3522_v4  ;;  %v476_v53 = vrot.slane %v3285_v57, %v3277_v55 }
  0xc6   :  { %v113_v42 = vmul.f32 %v99_v2, %v70_v25  ;;  %v486_v63 = vmul.f32 %v460_v60, %v450_v8  ;;  %v3537_v33 = vsel %vm815_vm10, %v808_v44, %v716_v51  ;;  %v803_v7 = vsel %vm797_vm7, %v660_v43, %v684_v19 }
  0xc7   :  { %v541_v25 = vrot.slane %v3285_v57, %v3322_v38 }
  0xc8   :  { %v740_v40 = vrot.slane %v486_v63, 6  ;;  %v3540_v5 = vpop.permute.xlu0 %375  ;;  %v3542_v48 = vpop.permute.xlu1 %497  ;;  %v785_v0 = vsel %vm779_vm5, %v113_v42, %v636_v6  ;;  %v352_v63 = vcombine.low %v322_v15, %v326_v61  ;;  %v3563_v6 = vld [vmem:[%s4253_s1 + $0x30] sm:$0xff]  ;;  %v152_v61 = vrot.slane %v3507_v35, %v3196_v24 }
  0xc9   :  { %v381_v56 = vsel %vm379_vm4, %v3339_v47, %v3540_v5  ;;  %v515_v9 = vsel %vm509_vm11, %v3354_v16, %v3542_v48  ;;  %v3556_v2 = vsel %vm788_vm6, %v785_v0, %v660_v43  ;;  %v3568_v47 = vld [vmem:[%s4253_s1 + $0x38] sm:$0xff]  ;;  %v338_v57 = vrot.slane %v3563_v6, %v3193_v23 }
  0xca   :  { %4274 = vst [vmem:[#allocation10_spill] sm:$0xff] %v3556_v2  ;;  %v425_v60 = vmul.f32 %v411_v29, %v381_v56  ;;  %v551_v19 = vmul.f32 %v525_v13, %v515_v9  ;;  %v826_v16 = vsel %vm824_vm12, %v716_v51, %v740_v40  ;;  %v156_v29 = vrot.slane %v3516_v41, %v3196_v24 }
  0xcb   :  { %v342_v13 = vrot.slane %v3568_v47, %v3193_v23  ;;  %v217_v40 = vrot.slane %v3507_v35, %v3220_v31  ;;  %v221_v51 = vrot.slane %v3516_v41, %v3220_v31  ;;  %v3596_v0 = vmul.f32 %v352_v63, %v3049_v3 }
  0xcc   :  { %v720_v15 = vrot.slane %v425_v60, 1  ;;  %v764_v43 = vrot.slane %v551_v19, 3  ;;  %v3579_v8 = vpop.permute.xlu0 %440  ;;  %v3581_v44 = vpop.permute.xlu1 %505  ;;  %v812_v56 = vsel %vm806_vm8, %v803_v7, %v3357_v32  ;;  %v87_v3 = vrot.slane %v3507_v35, %v3213_v28 }
  0xcd   :  { %4275 = vst [vmem:[#allocation11_spill] sm:$0xff] %v3581_v44  ;;  %v446_v42 = vsel %vm444_vm9, %v3374_v49, %v3579_v8  ;;  %v511_v23 = vsel %vm509_vm11, %v3396_v34, %v3581_v44  ;;  %v282_v49 = vrot.slane %v3507_v35, %v3209_v27  ;;  %v286_v34 = vrot.slane %v3516_v41, %v3209_v27 }
  0xce   :  { %v490_v9 = vmul.f32 %v476_v53, %v446_v42  ;;  %v555_v60 = vmul.f32 %v541_v25, %v511_v23  ;;  %v3601_v19 = vsel %vm833_vm13, %v826_v16, %v764_v43  ;;  %v3604_v2 = vsel %vm815_vm10, %v812_v56, %v720_v15 }
  0xcf   :  { %v354_v63 = vcombine.low %v338_v57, %v342_v13  ;;  %v91_v25 = vrot.slane %v3516_v41, %v3213_v28  ;;  %v168_v16 = vrot.slane %v3563_v6, %v3196_v24  ;;  %v233_v13 = vrot.slane %v3563_v6, %v3220_v31 }
  0xd0   :  { %v744_v44 = vrot.slane %v490_v9, 6  ;;  %v768_v32 = vrot.slane %v555_v60, 3  ;;  %v3612_v7 = vpop.permute.xlu0 %562  ;;  %v3614_v53 = vpop.permute.xlu1 %570  ;;  %v237_v42 = vrot.slane %v3568_v47, %v3220_v31  ;;  %v399_v60 = vrot.slane %v3507_v35, %v3238_v37 }
  0xd1   :  { %4276 = vst [vmem:[#allocation12_spill] sm:$0xff] %v3614_v53  ;;  %v3624_v43 = vsel %vm574_vm14, %v3423_v50, %v3614_v53  ;;  %v3644_v53 = vmul.f32 %v354_v63, %v3028_v1  ;;  %v415_v9 = vrot.slane %v3563_v6, %v3238_v37 }
  0xd2   :  { %4277 = vst [vmem:[#allocation13_spill] sm:$0xff] %v3624_v43  ;;  %v830_v50 = vsel %vm824_vm12, %v720_v15, %v744_v44 }
  0xd3   :  { %v3647_v31 = vsel %vm833_vm13, %v830_v50, %v768_v32 }
  0xd4   :  { %v121_v23 = vpop.permute.xlu0 %120  ;;  %v186_v43 = vpop.permute.xlu1 %185 }
  0xd5   :  { %v137_v1 = vsel %vm132_vm0, %v121_v23, %v3182_v18  ;;  %v138_v63 = vsel %vm132_vm0, %v3434_v26, %v121_v23  ;;  %v202_v32 = vsel %vm197_vm3, %v186_v43, %v3190_v22  ;;  %v203_v50 = vsel %vm197_vm3, %v3436_v62, %v186_v43 }
  0xd6   :  { %v175_v44 = vmul.f32 %v152_v61, %v138_v63  ;;  %v176_v15 = vmul.f32 %v156_v29, %v137_v1  ;;  %v241_v56 = vmul.f32 %v221_v51, %v202_v32  ;;  %v419_v18 = vrot.slane %v3568_v47, %v3238_v37 }
  0xd7   :  { %v529_v26 = vrot.slane %v3507_v35, %v3322_v38  ;;  %v533_v23 = vrot.slane %v3516_v41, %v3322_v38  ;;  %v702_v22 = vcombine.low %v3644_v53, %v3644_v53  ;;  %v240_v61 = vmul.f32 %v217_v40, %v203_v50 }
  0xd8   :  { %v633_v57 = vrot.slane %v175_v44, 5  ;;  %v634_v62 = vrot.slane %v176_v15, 5  ;;  %v251_v29 = vpop.permute.xlu0 %250  ;;  %v54_v51 = vpop.permute.xlu1 %53 }
  0xd9   :  { %v267_v1 = vsel %vm262_vm1, %v251_v29, %v3217_v30  ;;  %v268_v63 = vsel %vm262_vm1, %v3451_v54, %v251_v29  ;;  %v72_v32 = vsel %vm67_vm2, %v54_v51, %v3272_v52  ;;  %v73_v40 = vsel %vm67_vm2, %v3453_v58, %v54_v51  ;;  %v2497_v30 = vld [vmem:[%s4253_s1 + $0x48] ss:$0 sm:$0xff] }
  0xda   :  { %v305_v15 = vmul.f32 %v282_v49, %v268_v63  ;;  %v306_v44 = vmul.f32 %v286_v34, %v267_v1  ;;  %v110_v50 = vmul.f32 %v87_v3, %v73_v40  ;;  %v111_v43 = vmul.f32 %v91_v25, %v72_v32 }
  0xdb   :  { %v580_v54 = vsel %vm574_vm14, %v3410_v45, %v3612_v7  ;;  %v658_v29 = vrot.slane %v241_v56, 2  ;;  %v484_v52 = vrot.slane %v3568_v47, %v3277_v55  ;;  %v545_v58 = vrot.slane %v3563_v6, %v3322_v38 }
  0xdc   :  { %v681_v49 = vrot.slane %v305_v15, 7  ;;  %v682_v34 = vrot.slane %v306_v44, 7  ;;  %v129_v3 = vpop.permute.xlu0 %128  ;;  %v194_v25 = vpop.permute.xlu1 %193  ;;  %v782_v51 = vsel %vm779_vm5, %v110_v50, %v633_v57  ;;  %v783_v1 = vsel %vm779_vm5, %v111_v43, %v634_v62 }
  0xdd   :  { %v133_v63 = vsel %vm132_vm0, %v129_v3, %v3162_v11  ;;  %v134_v45 = vsel %vm132_vm0, %v3463_v39, %v129_v3  ;;  %v198_v56 = vsel %vm197_vm3, %v194_v25, %v3160_v10  ;;  %v199_v32 = vsel %vm197_vm3, %v3467_v36, %v194_v25 }
  0xde   :  { %v3718_v40 = vmul.f32 %v2497_v30, %v580_v54  ;;  %v657_v57 = vrot.slane %v240_v61, 2  ;;  %v179_v62 = vmul.f32 %v168_v16, %v134_v45  ;;  %v549_v43 = vrot.slane %v3568_v47, %v3322_v38 }
  0xdf   :  { %v244_v11 = vmul.f32 %v233_v13, %v199_v32  ;;  %v3722_v15 = vmul.f32 %v237_v42, %v198_v56  ;;  %v3725_v39 = vsel %vm788_vm6, %v783_v1, %v658_v29  ;;  %v801_v44 = vsel %vm797_vm7, %v658_v29, %v682_v34 }
  0xe0   :  { %v4278_v10 = vrot.slane %v3568_v47, %v3196_v24  ;;  %v637_v36 = vrot.slane %v179_v62, 5  ;;  %v259_v30 = vpop.permute.xlu0 %258  ;;  %v370_v54 = vpop.permute.xlu1 %369  ;;  %v791_v16 = vsel %vm788_vm6, %v782_v51, %v657_v57  ;;  %v800_v61 = vsel %vm797_vm7, %v657_v57, %v681_v49 }
  0xe1   :  { %v263_v13 = vsel %vm262_vm1, %v259_v30, %v3168_v12  ;;  %v264_v42 = vsel %vm262_vm1, %v3488_v59, %v259_v30  ;;  %v383_v24 = vsel %vm379_vm4, %v370_v54, %v3337_v46  ;;  %v384_v29 = vsel %vm379_vm4, %v3490_v17, %v370_v54 }
  0xe2   :  { %v180_v50 = vmul.f32 %v4278_v10, %v133_v63  ;;  %v4279_v34 = vrot.slane %v3563_v6, %v3209_v27  ;;  %v4280_v3 = vrot.slane %v3568_v47, %v3209_v27  ;;  %v422_v59 = vmul.f32 %v399_v60, %v384_v29  ;;  %925 = vxpose.xlu0.b32.start [1/4] (short) %v791_v16, 128  ;;  %v4283_v10 = vld [vmem:[#allocation5_spill] sm:$0xff] }
  0xe3   :  { %v4281_v25 = vrot.slane %v3516_v41, %v3238_v37  ;;  %v661_v51 = vrot.slane %v244_v11, 2  ;;  %v662_v17 = vrot.slane %v3722_v15, 2  ;;  %v4282_v1 = vcombine.low %v3596_v0, %v3596_v0 }
  0xe4   :  { %v309_v49 = vmul.f32 %v4279_v34, %v264_v42  ;;  %v310_v12 = vmul.f32 %v4280_v3, %v263_v13  ;;  %v810_v27 = vsel %vm806_vm8, %v801_v44, %v3596_v0  ;;  %v717_v60 = vrot.slane %v422_v59, 1  ;;  %v62_v57 = vpop.permute.xlu0 %61  ;;  %v435_v62 = vpop.permute.xlu1 %434 }
  0xe5   :  { %v3757_v46 = vmul.f32 %v4281_v25, %v383_v24  ;;  %v809_v63 = vsel %vm806_vm8, %v800_v61, %v4282_v1  ;;  %v68_v11 = vsel %vm67_vm2, %v62_v57, %v3176_v14  ;;  %v69_v15 = vsel %vm67_vm2, %v3520_v21, %v62_v57  ;;  %v4288_v24 = vld [vmem:[#allocation9_spill] sm:$0xff] }
  0xe6   :  { %v685_v45 = vrot.slane %v309_v49, 7  ;;  %v686_v56 = vrot.slane %v310_v12, 7  ;;  %v448_v30 = vsel %vm444_vm9, %v435_v62, %v4283_v10  ;;  %v449_v0 = vsel %vm444_vm9, %v3522_v4, %v435_v62  ;;  %893 = vxpose.xlu1.b32.start [1/4] (short) %v4288_v24, 128 }
  0xe7   :  { %v718_v32 = vrot.slane %v3757_v46, 1  ;;  %v4284_v44 = vrot.slane %v3563_v6, %v3213_v28  ;;  %v4285_v16 = vrot.slane %v3568_v47, %v3213_v28  ;;  %v4286_v61 = vrot.slane %v3507_v35, %v3277_v55  ;;  %v4296_v46 = vld [vmem:[#allocation10_spill] sm:$0xff] }
  0xe8   :  { %v4287_v13 = vrot.slane %v3516_v41, %v3277_v55  ;;  %v818_v4 = vsel %vm815_vm10, %v809_v63, %v717_v60  ;;  %v804_v29 = vsel %vm797_vm7, %v661_v51, %v685_v45  ;;  %v805_v28 = vsel %vm797_vm7, %v662_v17, %v686_v56  ;;  %v378_v59 = vpop.permute.xlu0 %377  ;;  %v500_v25 = vpop.permute.xlu1 %499  ;;  %v4289_v45 = vld [vmem:[#allocation2_spill] sm:$0xff] }
  0xe9   :  { %v114_v54 = vmul.f32 %v4284_v44, %v69_v15  ;;  %v115_v14 = vmul.f32 %v4285_v16, %v68_v11  ;;  %v487_v21 = vmul.f32 %v4286_v61, %v449_v0  ;;  %v3797_v34 = vsel %vm815_vm10, %v810_v27, %v718_v32  ;;  %926 = vxpose.xlu0.b32.cont [2/4] (short) %v818_v4, 128  ;;  %v4290_v27 = vld [vmem:[#allocation6_spill] sm:$0xff] }
  0xea   :  { %v488_v42 = vmul.f32 %v4287_v13, %v448_v30  ;;  %v638_v49 = vrot.slane %v180_v50, 5  ;;  %v380_v63 = vsel %vm379_vm4, %v3540_v5, %v378_v59  ;;  %v387_v57 = vsel %vm379_vm4, %v378_v59, %v4289_v45  ;;  %894 = vxpose.xlu1.b32.cont [2/4] (short) %v3537_v33, 128  ;;  %v4292_v30 = vld [vmem:[#allocation11_spill] sm:$0xff] }
  0xeb   :  { %v741_v3 = vrot.slane %v487_v21, 6  ;;  %v786_v1 = vsel %vm779_vm5, %v114_v54, %v637_v36  ;;  %v513_v56 = vsel %vm509_vm11, %v500_v25, %v4290_v27  ;;  %v514_v50 = vsel %vm509_vm11, %v3542_v48, %v500_v25  ;;  %v2498_v21 = vld [vmem:[%s4253_s1 + $0x50] ss:$0 sm:$0xff]  ;;  %v2501_v45 = vld [vmem:[%s4253_s1 + $0x68] ss:$0 sm:$0xff] }
  0xec   :  { %v742_v12 = vrot.slane %v488_v42, 6  ;;  %v426_v36 = vmul.f32 %v415_v9, %v380_v63  ;;  %v427_v5 = vmul.f32 %v419_v18, %v387_v57  ;;  %v552_v62 = vmul.f32 %v529_v26, %v514_v50  ;;  %v443_v10 = vpop.permute.xlu0 %442  ;;  %v508_v41 = vpop.permute.xlu1 %507  ;;  %v4295_v42 = vld [vmem:[#allocation8_spill] sm:$0xff] }
  0xed   :  { %v553_v11 = vmul.f32 %v533_v23, %v513_v56  ;;  %v795_v48 = vsel %vm788_vm6, %v786_v1, %v661_v51  ;;  %v813_v9 = vsel %vm806_vm8, %v804_v29, %v702_v22  ;;  %v787_v37 = vsel %vm779_vm5, %v115_v14, %v638_v49  ;;  %v4291_v51 = vld [vmem:[#allocation3_spill] sm:$0xff]  ;;  %v4297_v56 = vld [vmem:[#allocation13_spill] sm:$0xff] }
  0xee   :  { %v814_v18 = vsel %vm806_vm8, %v805_v28, %v3644_v53  ;;  %v721_v35 = vrot.slane %v426_v36, 1  ;;  %v722_v26 = vrot.slane %v427_v5, 1  ;;  %v765_v15 = vrot.slane %v552_v62, 3  ;;  %v4293_v53 = vld [vmem:[#allocation4_spill] sm:$0xff]  ;;  %895 = vxpose.xlu1.b32.cont [3/4] (short) %v3601_v19, 128 }
  0xef   :  { %v827_v23 = vsel %vm824_vm12, %v717_v60, %v741_v3  ;;  %v445_v33 = vsel %vm444_vm9, %v3579_v8, %v443_v10  ;;  %v452_v22 = vsel %vm444_vm9, %v443_v10, %v4291_v51  ;;  %v510_v0 = vsel %vm509_vm11, %v4292_v30, %v508_v41  ;;  %v2502_v36 = vld [vmem:[%s4253_s1 + $0x70] ss:$0 sm:$0xff] }
  0xf0   :  { %v517_v44 = vsel %vm509_vm11, %v508_v41, %v4293_v53  ;;  %v4294_v54 = vrot.slane %v3563_v6, %v3277_v55  ;;  %v492_v8 = vmul.f32 %v484_v52, %v452_v22  ;;  %v556_v16 = vmul.f32 %v545_v58, %v510_v0  ;;  %v565_v19 = vpop.permute.xlu1 %564  ;;  %v4298_v5 = vld [vmem:[#allocation12_spill] sm:$0xff] }
  0xf1   :  { %v557_v14 = vmul.f32 %v549_v43, %v517_v44  ;;  %v836_v61 = vsel %vm833_vm13, %v827_v23, %v765_v15  ;;  %v822_v13 = vsel %vm815_vm10, %v813_v9, %v721_v35  ;;  %v3866_v55 = vsel %vm788_vm6, %v787_v37, %v662_v17 }
  0xf2   :  { %v491_v60 = vmul.f32 %v4294_v54, %v445_v33  ;;  %v3869_v6 = vsel %vm815_vm10, %v814_v18, %v722_v26  ;;  %v766_v52 = vrot.slane %v553_v11, 3  ;;  %v746_v38 = vrot.slane %v492_v8, 6  ;;  %927 = vxpose.xlu0.b32.cont [3/4] (short) %v836_v61, 128 }
  0xf3   :  { %v769_v47 = vrot.slane %v556_v16, 3  ;;  %v770_v43 = vrot.slane %v557_v14, 3  ;;  %v3874_v24 = vsel %vm574_vm14, %v565_v19, %v4295_v42  ;;  %v579_v17 = vsel %vm574_vm14, %v3612_v7, %v565_v19 }
  0xf4   :  { %v745_v58 = vrot.slane %v491_v60, 6  ;;  %v843_v4 = vsel %vm779_vm5, %v3718_v40, 0.0  ;;  %v617_v29 = vmul.f32 %v2498_v21, %v579_v17  ;;  %v828_v49 = vsel %vm824_vm12, %v718_v32, %v742_v12  ;;  %v3894_v40 = vpop.permute.xlu0 %572 }
  0xf5   :  { %896 = vxpose.xlu1.b32.end [4/4] (short) %v843_v4, 128  ;;  %v832_v3 = vsel %vm824_vm12, %v722_v26, %v746_v38  ;;  %v3889_v1 = vsel %vm833_vm13, %v828_v49, %v766_v52  ;;  %v620_v50 = vmul.f32 %v2501_v45, %v4297_v56  ;;  %v575_v62 = vsel %vm574_vm14, %v4298_v5, %v3894_v40  ;;  %v2499_v38 = vld [vmem:[%s4253_s1 + $0x58] ss:$0 sm:$0xff] }
  0xf6   :  { %v831_v28 = vsel %vm824_vm12, %v721_v35, %v745_v58  ;;  %v844_v59 = vsel %vm779_vm5, %v617_v29, 0.0  ;;  %v3892_v7 = vsel %vm833_vm13, %v832_v3, %v770_v43  ;;  %v2503_v43 = vld [vmem:[%s4253_s1 + $0x78] ss:$0 sm:$0xff] }
  0xf7   :  { %v840_v25 = vsel %vm833_vm13, %v831_v28, %v769_v47  ;;  %928 = vxpose.xlu0.b32.end [4/4] (short) %v844_v59, 128  ;;  %v847_v9 = vsel %vm779_vm5, %v620_v50, 0.0 }
 0x121   :  { %v877_v63 = vpop.trf.xlu0 }
 0x122   :  { %2773 = vmatprep.mubr.msk.f32.mxu0 %vm1117_vm15, %v877_v63 }
 0x125   :  { %v878_v32 = vpop.trf.xlu0  ;;  %v1005_v12 = vpop.trf.xlu1 }
 0x126   :  { %1021 = vxpose.xlu1.b32.start [1/4] (short) %v4296_v46, 128  ;;  %2869 = vmatprep.mubr.msk.f32.mxu1 %vm1117_vm15, %v1005_v12 }
 0x127   :  { %2774 = vmatmul.mubr.msk.f32.vlgmr.msra.gmra.mxu0 %vm1117_vm15, %v878_v32 }
 0x128   :  { %1053 = vxpose.xlu0.b32.start [1/4] (short) %v795_v48, 128 }
 0x129   :  { %v879_v57 = vpop.trf.xlu0  ;;  %v1006_v27 = vpop.trf.xlu1 }
 0x12a   :  { %1022 = vxpose.xlu1.b32.cont [2/4] (short) %v3604_v2, 128  ;;  %2870 = vmatmul.mubr.msk.f32.vlgmr.msra.gmra.mxu1 %vm1117_vm15, %v1006_v27  ;;  %v621_v2 = vmul.f32 %v2502_v36, %v575_v62 }
 0x12b   :  { %2776 = vmatprep.mubr.msk.f32.mxu0 %vm1117_vm15, %v879_v57 }
 0x12c   :  { %1054 = vxpose.xlu0.b32.cont [2/4] (short) %v822_v13, 128  ;;  %v848_v35 = vsel %vm779_vm5, %v621_v2, 0.0 }
 0x12d   :  { %v880_v11 = vpop.trf.xlu0  ;;  %v1007_v48 = vpop.trf.xlu1 }
 0x12e   :  { %1023 = vxpose.xlu1.b32.cont [3/4] (short) %v3647_v31, 128  ;;  %2777 = vmatmul.mubr.msk.f32.gmra.mxu0 %vm1117_vm15, %v880_v11 }
 0x12f   :  { %2872 = vmatprep.mubr.msk.f32.mxu1 %vm1117_vm15, %v1007_v48 }
 0x130   :  { %1055 = vxpose.xlu0.b32.cont [3/4] (short) %v840_v25, 128 }
 0x131   :  { %v881_v37 = vpop.trf.xlu0  ;;  %v1008_v18 = vpop.trf.xlu1 }
 0x132   :  { %1024 = vxpose.xlu1.b32.end [4/4] (short) %v847_v9, 128  ;;  %2873 = vmatmul.mubr.msk.f32.gmra.mxu1 %vm1117_vm15, %v1008_v18 }
 0x133   :  { %2779 = vmatprep.mubr.msk.f32.mxu0 %vm1117_vm15, %v881_v37 }
 0x134   :  { %1056 = vxpose.xlu0.b32.end [4/4] (short) %v848_v35, 128 }
 0x135   :  { %v882_v31 = vpop.trf.xlu0  ;;  %v1009_v26 = vpop.trf.xlu1 }
 0x136   :  { %2780 = vmatmul.mubr.msk.f32.gmra.mxu0 %vm1117_vm15, %v882_v31  ;;  %2875 = vmatprep.mubr.msk.f32.mxu1 %vm1117_vm15, %v1009_v26 }
 0x139   :  { %v883_v15 = vpop.trf.xlu0  ;;  %v1010_v10 = vpop.trf.xlu1 }
 0x13a   :  { %2876 = vmatmul.mubr.msk.f32.gmra.mxu1 %vm1117_vm15, %v1010_v10  ;;  %2782 = vmatprep.mubr.msk.f32.mxu0 %vm1117_vm15, %v883_v15 }
 0x13d   :  { %v884_v41 = vpop.trf.xlu0  ;;  %v1011_v23 = vpop.trf.xlu1 }
 0x13e   :  { %2783 = vmatmul.mubr.msk.f32.gmra.mxu0 %vm1117_vm15, %v884_v41  ;;  %2878 = vmatprep.mubr.msk.f32.mxu1 %vm1117_vm15, %v1011_v23 }
 0x141   :  { %v885_v33 = vpop.trf.xlu0  ;;  %v1012_v51 = vpop.trf.xlu1 }
 0x142   :  { %2879 = vmatmul.mubr.msk.f32.gmra.mxu1 %vm1117_vm15, %v1012_v51  ;;  %2785 = vmatprep.mubr.msk.f32.mxu0 %vm1117_vm15, %v885_v33 }
 0x145   :  { %v886_v22 = vpop.trf.xlu0  ;;  %v1013_v30 = vpop.trf.xlu1 }
 0x146   :  { %2786 = vmatmul.mubr.msk.f32.gmra.mxu0 %vm1117_vm15, %v886_v22  ;;  %2881 = vmatprep.mubr.msk.f32.mxu1 %vm1117_vm15, %v1013_v30 }
 0x149   :  { %v887_v0 = vpop.trf.xlu0  ;;  %v1014_v53 = vpop.trf.xlu1 }
 0x14a   :  { %2882 = vmatmul.mubr.msk.f32.gmra.mxu1 %vm1117_vm15, %v1014_v53  ;;  %2788 = vmatprep.mubr.msk.f32.mxu0 %vm1117_vm15, %v887_v0 }
 0x14d   :  { %v888_v44 = vpop.trf.xlu0  ;;  %v1015_v54 = vpop.trf.xlu1 }
 0x14e   :  { %2789 = vmatmul.mubr.msk.f32.gmra.mxu0 %vm1117_vm15, %v888_v44  ;;  %2884 = vmatprep.mubr.msk.f32.mxu1 %vm1117_vm15, %v1015_v54 }
 0x151   :  { %v889_v60 = vpop.trf.xlu0  ;;  %v1016_v8 = vpop.trf.xlu1 }
 0x152   :  { %2885 = vmatmul.mubr.msk.f32.gmra.mxu1 %vm1117_vm15, %v1016_v8  ;;  %2791 = vmatprep.mubr.msk.f32.mxu0 %vm1117_vm15, %v889_v60 }
 0x155   :  { %v890_v16 = vpop.trf.xlu0  ;;  %v1017_v14 = vpop.trf.xlu1 }
 0x156   :  { %2792 = vmatmul.mubr.msk.f32.gmra.mxu0 %vm1117_vm15, %v890_v16  ;;  %2887 = vmatprep.mubr.msk.f32.mxu1 %vm1117_vm15, %v1017_v14 }
 0x159   :  { %v891_v61 = vpop.trf.xlu0  ;;  %v1018_v21 = vpop.trf.xlu1 }
 0x15a   :  { %2888 = vmatmul.mubr.msk.f32.gmra.mxu1 %vm1117_vm15, %v1018_v21  ;;  %2794 = vmatprep.mubr.msk.f32.mxu0 %vm1117_vm15, %v891_v61 }
 0x15d   :  { %v892_v13 = vpop.trf.xlu0  ;;  %v1019_v52 = vpop.trf.xlu1 }
 0x15e   :  { %2795 = vmatmul.mubr.msk.f32.gmra.mxu0 %vm1117_vm15, %v892_v13  ;;  %2890 = vmatprep.mubr.msk.f32.mxu1 %vm1117_vm15, %v1019_v52 }
 0x161   :  { %v1020_v58 = vpop.trf.xlu1 }
 0x162   :  { %2891 = vmatmul.mubr.msk.f32.gmra.mxu1 %vm1117_vm15, %v1020_v58 }
 0x163   :  { %957 = vxpose.xlu1.b32.start [1/4] (short) %v3725_v39, 128  ;;  %v4299_v39 = vld [vmem:[#allocation7_spill] sm:$0xff] }
 0x164   :  { %v582_v42 = vsel %vm574_vm14, %v3894_v40, %v4299_v39 }
 0x165   :  { %1085 = vxpose.xlu0.b32.start [1/4] (short) %v3866_v55, 128  ;;  %v909_v19 = vpop.trf.xlu1  ;;  %v618_v55 = vmul.f32 %v2499_v38, %v3874_v24  ;;  %v622_v4 = vmul.f32 %v2503_v43, %v582_v42 }
 0x166   :  { %2797 = vmatprep.mubr.msk.f32.mxu0 %vm1117_vm15, %v909_v19 }
 0x167   :  { %958 = vxpose.xlu1.b32.cont [2/4] (short) %v3797_v34, 128  ;;  %v941_v47 = vpop.trf.xlu0  ;;  %v845_v29 = vsel %vm779_vm5, %v618_v55, 0.0  ;;  %v849_v20 = vsel %vm779_vm5, %v622_v4, 0.0 }
 0x169   :  { %1086 = vxpose.xlu0.b32.cont [2/4] (short) %v3869_v6, 128  ;;  %v910_v17 = vpop.trf.xlu1 }
 0x16a   :  { %2798 = vmatmul.mubr.msk.f32.gmra.mxu0 %vm1117_vm15, %v910_v17 }
 0x16b   :  { %959 = vxpose.xlu1.b32.cont [3/4] (short) %v3889_v1, 128  ;;  %v942_v34 = vpop.trf.xlu0 }
 0x16d   :  { %1087 = vxpose.xlu0.b32.cont [3/4] (short) %v3892_v7, 128  ;;  %v911_v49 = vpop.trf.xlu1 }
 0x16e   :  { %2800 = vmatprep.mubr.msk.f32.mxu0 %vm1117_vm15, %v911_v49 }
 0x16f   :  { %960 = vxpose.xlu1.b32.end [4/4] (short) %v845_v29, 128  ;;  %v943_v28 = vpop.trf.xlu0 }
 0x171   :  { %1088 = vxpose.xlu0.b32.end [4/4] (short) %v849_v20, 128  ;;  %v912_v24 = vpop.trf.xlu1 }
 0x172   :  { %2801 = vmatmul.mubr.msk.f32.gmra.mxu0 %vm1117_vm15, %v912_v24 }
 0x173   :  { %v944_v6 = vpop.trf.xlu0 }
 0x175   :  { %v913_v59 = vpop.trf.xlu1 }
 0x176   :  { %2803 = vmatprep.mubr.msk.f32.mxu0 %vm1117_vm15, %v913_v59 }
 0x177   :  { %v945_v3 = vpop.trf.xlu0 }
 0x179   :  { %v914_v1 = vpop.trf.xlu1 }
 0x17a   :  { %2804 = vmatmul.mubr.msk.f32.gmra.mxu0 %vm1117_vm15, %v914_v1 }
 0x17b   :  { %v946_v25 = vpop.trf.xlu0 }
 0x17d   :  { %v915_v40 = vpop.trf.xlu1 }
 0x17e   :  { %2806 = vmatprep.mubr.msk.f32.mxu0 %vm1117_vm15, %v915_v40 }
 0x17f   :  { %v947_v7 = vpop.trf.xlu0 }
 0x181   :  { %v916_v46 = vpop.trf.xlu1 }
 0x182   :  { %2807 = vmatmul.mubr.msk.f32.gmra.mxu0 %vm1117_vm15, %v916_v46 }
 0x183   :  { %v948_v63 = vpop.trf.xlu0 }
 0x185   :  { %v917_v12 = vpop.trf.xlu1 }
 0x186   :  { %2809 = vmatprep.mubr.msk.f32.mxu0 %vm1117_vm15, %v917_v12 }
 0x187   :  { %v949_v32 = vpop.trf.xlu0 }
 0x189   :  { %v918_v57 = vpop.trf.xlu1 }
 0x18a   :  { %2810 = vmatmul.mubr.msk.f32.gmra.mxu0 %vm1117_vm15, %v918_v57 }
 0x18b   :  { %v950_v45 = vpop.trf.xlu0 }
 0x18d   :  { %v919_v56 = vpop.trf.xlu1 }
 0x18e   :  { %2812 = vmatprep.mubr.msk.f32.mxu0 %vm1117_vm15, %v919_v56 }
 0x18f   :  { %v951_v27 = vpop.trf.xlu0 }
 0x191   :  { %v920_v36 = vpop.trf.xlu1 }
 0x192   :  { %2813 = vmatmul.mubr.msk.f32.gmra.mxu0 %vm1117_vm15, %v920_v36 }
 0x193   :  { %v952_v50 = vpop.trf.xlu0 }
 0x195   :  { %v921_v62 = vpop.trf.xlu1 }
 0x196   :  { %2815 = vmatprep.mubr.msk.f32.mxu0 %vm1117_vm15, %v921_v62 }
 0x197   :  { %v953_v5 = vpop.trf.xlu0 }
 0x199   :  { %v922_v11 = vpop.trf.xlu1 }
 0x19a   :  { %2816 = vmatmul.mubr.msk.f32.gmra.mxu0 %vm1117_vm15, %v922_v11 }
 0x19b   :  { %v954_v2 = vpop.trf.xlu0 }
 0x19d   :  { %v923_v9 = vpop.trf.xlu1 }
 0x19e   :  { %2818 = vmatprep.mubr.msk.f32.mxu0 %vm1117_vm15, %v923_v9 }
 0x19f   :  { %v955_v48 = vpop.trf.xlu0 }
 0x1a1   :  { %v924_v18 = vpop.trf.xlu1 }
 0x1a2   :  { %2819 = vmatmul.mubr.msk.f32.gmra.mxu0 %vm1117_vm15, %v924_v18 }
 0x1a3   :  { %v956_v37 = vpop.trf.xlu0  ;;  %2821 = vmatprep.mubr.msk.f32.mxu0 %vm1117_vm15, %v941_v47 }
 0x1a5   :  { %v1037_v31 = vpop.trf.xlu1 }
 0x1a6   :  { %2822 = vmatmul.mubr.msk.f32.gmra.mxu0 %vm1117_vm15, %v942_v34  ;;  %2893 = vmatprep.mubr.msk.f32.mxu1 %vm1117_vm15, %v1037_v31 }
 0x1a7   :  { %v3980_v35 = vpop.trf.xlu0  ;;  %2824 = vmatprep.mubr.msk.f32.mxu0 %vm1117_vm15, %v943_v28  ;;  %v4048_v28 = vld [vmem:[%s4255_s3] ss:$0 sm:$0xff] }
 0x1a9   :  { %v1038_v15 = vpop.trf.xlu1 }
 0x1aa   :  { %2825 = vmatmul.mubr.msk.f32.gmra.mxu0 %vm1117_vm15, %v944_v6  ;;  %2894 = vmatmul.mubr.msk.f32.gmra.mxu1 %vm1117_vm15, %v1038_v15 }
 0x1ab   :  { %v3985_v26 = vpop.trf.xlu0  ;;  %2827 = vmatprep.mubr.msk.f32.mxu0 %vm1117_vm15, %v945_v3 }
 0x1ad   :  { %v1039_v41 = vpop.trf.xlu1 }
 0x1ae   :  { %2828 = vmatmul.mubr.msk.f32.gmra.mxu0 %vm1117_vm15, %v946_v25  ;;  %2896 = vmatprep.mubr.msk.f32.mxu1 %vm1117_vm15, %v1039_v41 }
 0x1af   :  { %v1071_v10 = vpop.trf.xlu0  ;;  %2830 = vmatprep.mubr.msk.f32.mxu0 %vm1117_vm15, %v947_v7 }
 0x1b1   :  { %v1040_v33 = vpop.trf.xlu1 }
 0x1b2   :  { %2831 = vmatmul.mubr.msk.f32.gmra.mxu0 %vm1117_vm15, %v948_v63  ;;  %2897 = vmatmul.mubr.msk.f32.gmra.mxu1 %vm1117_vm15, %v1040_v33 }
 0x1b3   :  { %v1072_v23 = vpop.trf.xlu0  ;;  %2833 = vmatprep.mubr.msk.f32.mxu0 %vm1117_vm15, %v949_v32 }
 0x1b5   :  { %v1041_v22 = vpop.trf.xlu1 }
 0x1b6   :  { %2834 = vmatmul.mubr.msk.f32.gmra.mxu0 %vm1117_vm15, %v950_v45  ;;  %2899 = vmatprep.mubr.msk.f32.mxu1 %vm1117_vm15, %v1041_v22 }
 0x1b7   :  { %v1073_v51 = vpop.trf.xlu0  ;;  %2836 = vmatprep.mubr.msk.f32.mxu0 %vm1117_vm15, %v951_v27 }
 0x1b9   :  { %v1042_v0 = vpop.trf.xlu1 }
 0x1ba   :  { %2837 = vmatmul.mubr.msk.f32.gmra.mxu0 %vm1117_vm15, %v952_v50  ;;  %2900 = vmatmul.mubr.msk.f32.gmra.mxu1 %vm1117_vm15, %v1042_v0 }
 0x1bb   :  { %v3999_v30 = vpop.trf.xlu0  ;;  %2839 = vmatprep.mubr.msk.f32.mxu0 %vm1117_vm15, %v953_v5 }
 0x1bd   :  { %v1043_v44 = vpop.trf.xlu1 }
 0x1be   :  { %2840 = vmatmul.mubr.msk.f32.gmra.mxu0 %vm1117_vm15, %v954_v2  ;;  %2902 = vmatprep.mubr.msk.f32.mxu1 %vm1117_vm15, %v1043_v44 }
 0x1bf   :  { %v4004_v53 = vpop.trf.xlu0  ;;  %2842 = vmatprep.mubr.msk.f32.mxu0 %vm1117_vm15, %v955_v48 }
 0x1c1   :  { %v1044_v60 = vpop.trf.xlu1 }
 0x1c2   :  { %2843 = vmatmul.mubr.msk.f32.gmra.mxu0 %vm1117_vm15, %v956_v37  ;;  %2903 = vmatmul.mubr.msk.f32.gmra.mxu1 %vm1117_vm15, %v1044_v60 }
 0x1c3   :  { %v4009_v54 = vpop.trf.xlu0 }
 0x1c5   :  { %v1045_v16 = vpop.trf.xlu1 }
 0x1c6   :  { %2905 = vmatprep.mubr.msk.f32.mxu1 %vm1117_vm15, %v1045_v16 }
 0x1c7   :  { %v4013_v8 = vpop.trf.xlu0 }
 0x1c9   :  { %v1046_v61 = vpop.trf.xlu1 }
 0x1ca   :  { %2906 = vmatmul.mubr.msk.f32.gmra.mxu1 %vm1117_vm15, %v1046_v61 }
 0x1cb   :  { %v4016_v14 = vpop.trf.xlu0 }
 0x1cd   :  { %v1047_v13 = vpop.trf.xlu1 }
 0x1ce   :  { %2908 = vmatprep.mubr.msk.f32.mxu1 %vm1117_vm15, %v1047_v13 }
 0x1cf   :  { %v4019_v21 = vpop.trf.xlu0 }
 0x1d1   :  { %v1048_v58 = vpop.trf.xlu1 }
 0x1d2   :  { %2909 = vmatmul.mubr.msk.f32.gmra.mxu1 %vm1117_vm15, %v1048_v58 }
 0x1d3   :  { %v4022_v52 = vpop.trf.xlu0 }
 0x1d5   :  { %v1049_v47 = vpop.trf.xlu1 }
 0x1d6   :  { %2911 = vmatprep.mubr.msk.f32.mxu1 %vm1117_vm15, %v1049_v47 }
 0x1d7   :  { %v4025_v38 = vpop.trf.xlu0 }
 0x1d9   :  { %v1050_v43 = vpop.trf.xlu1 }
 0x1da   :  { %2912 = vmatmul.mubr.msk.f32.gmra.mxu1 %vm1117_vm15, %v1050_v43 }
 0x1db   :  { %v4028_v19 = vpop.trf.xlu0 }
 0x1dd   :  { %v1051_v42 = vpop.trf.xlu1 }
 0x1de   :  { %2914 = vmatprep.mubr.msk.f32.mxu1 %vm1117_vm15, %v1051_v42 }
 0x1df   :  { %v4031_v39 = vpop.trf.xlu0 }
 0x1e1   :  { %v1052_v34 = vpop.trf.xlu1 }
 0x1e2   :  { %2915 = vmatmul.mubr.msk.f32.gmra.mxu1 %vm1117_vm15, %v1052_v34 }
 0x1e3   :  { %v4034_v55 = vpop.trf.xlu0  ;;  %2917 = vmatprep.mubr.msk.f32.mxu1 %vm1117_vm15, %v3980_v35 }
 0x1e5   :  { %v973_v4 = vpop.trf.xlu1 }
 0x1e6   :  { %2845 = vmatprep.mubr.msk.f32.mxu0 %vm1117_vm15, %v973_v4  ;;  %2918 = vmatmul.mubr.msk.f32.gmra.mxu1 %vm1117_vm15, %v3985_v26 }
 0x1e7   :  { %v4039_v17 = vpop.trf.xlu0  ;;  %2920 = vmatprep.mubr.msk.f32.mxu1 %vm1117_vm15, %v1071_v10  ;;  %v2775_v29 = vpop.f32.mrf.mxu0 }
 0x1e8   :  { %v1574_v49 = vadd.f32 %v2775_v29, %v4048_v28 }
 0x1e9   :  { %v974_v6 = vpop.trf.xlu1  ;;  %v1568_v3 = vpop.f32.mrf.mxu0 }
 0x1ea   :  { %2846 = vmatmul.mubr.msk.f32.gmra.mxu0 %vm1117_vm15, %v974_v6  ;;  %v2871_v24 = vpop.f32.mrf.mxu1  ;;  %2921 = vmatmul.mubr.msk.f32.gmra.mxu1 %vm1117_vm15, %v1072_v23  ;;  %v2208_v59 = vmax.f32 %v1574_v49, 0.0  ;;  %v1569_v1 = vadd.f32 %v4048_v28, %v1568_v3 }
 0x1eb   :  { %v4051_v20 = vpop.trf.xlu0  ;;  %v1894_v25 = vadd.f32 %v2871_v24, %v4048_v28  ;;  %2923 = vmatprep.mubr.msk.f32.mxu1 %vm1117_vm15, %v1073_v51 }
 0x1ec   :  { %v1888_v7 = vpop.f32.mrf.mxu1  ;;  %v2207_v40 = vmax.f32 %v1569_v1, 0.0 }
 0x1ed   :  { %v1889_v63 = vadd.f32 %v4048_v28, %v1888_v7  ;;  %v975_v32 = vpop.trf.xlu1  ;;  %v2272_v45 = vmax.f32 %v1894_v25, 0.0 }
 0x1ee   :  { %v2778_v12 = vpop.f32.mrf.mxu0  ;;  %2848 = vmatprep.mubr.msk.f32.mxu0 %vm1117_vm15, %v975_v32  ;;  %2924 = vmatmul.mubr.msk.f32.gmra.mxu1 %vm1117_vm15, %v3999_v30  ;;  %v2335_v57 = vadd.f32 %v2208_v59, %v2207_v40 }
 0x1ef   :  { %v4059_v46 = vpop.trf.xlu0  ;;  %v2271_v27 = vmax.f32 %v1889_v63, 0.0  ;;  %v1584_v56 = vadd.f32 %v2778_v12, %v4048_v28  ;;  %2926 = vmatprep.mubr.msk.f32.mxu1 %vm1117_vm15, %v4004_v53 }
 0x1f0   :  { %v1578_v50 = vpop.f32.mrf.mxu0 }
 0x1f1   :  { %v2412_v36 = vadd.f32 %v2272_v45, %v2271_v27  ;;  %v1579_v5 = vadd.f32 %v4048_v28, %v1578_v50  ;;  %v976_v2 = vpop.trf.xlu1  ;;  %v2210_v48 = vmax.f32 %v1584_v56, 0.0 }
 0x1f2   :  { %2849 = vmatmul.mubr.msk.f32.gmra.mxu0 %vm1117_vm15, %v976_v2  ;;  %v2874_v11 = vpop.f32.mrf.mxu1  ;;  %2927 = vmatmul.mubr.msk.f32.gmra.mxu1 %vm1117_vm15, %v4009_v54 }
 0x1f3   :  { %v4068_v62 = vpop.trf.xlu0  ;;  %v2209_v9 = vmax.f32 %v1579_v5, 0.0  ;;  %2929 = vmatprep.mubr.msk.f32.mxu1 %vm1117_vm15, %v4013_v8  ;;  %v1904_v35 = vadd.f32 %v2874_v11, %v4048_v28 }
 0x1f4   :  { %v1898_v37 = vpop.f32.mrf.mxu1 }
 0x1f5   :  { %v2336_v18 = vadd.f32 %v2335_v57, %v2209_v9  ;;  %v1899_v31 = vadd.f32 %v4048_v28, %v1898_v37  ;;  %v977_v15 = vpop.trf.xlu1  ;;  %v2274_v22 = vmax.f32 %v1904_v35, 0.0 }
 0x1f6   :  { %v2781_v10 = vpop.f32.mrf.mxu0  ;;  %2851 = vmatprep.mubr.msk.f32.mxu0 %vm1117_vm15, %v977_v15  ;;  %2930 = vmatmul.mubr.msk.f32.gmra.mxu1 %vm1117_vm15, %v4016_v14 }
 0x1f7   :  { %v4077_v26 = vpop.trf.xlu0  ;;  %v2273_v41 = vmax.f32 %v1899_v31, 0.0  ;;  %v1594_v23 = vadd.f32 %v2781_v10, %v4048_v28  ;;  %2932 = vmatprep.mubr.msk.f32.mxu1 %vm1117_vm15, %v4019_v21  ;;  %v2337_v33 = vadd.f32 %v2336_v18, %v2210_v48 }
 0x1f8   :  { %v1588_v51 = vpop.f32.mrf.mxu0 }
 0x1f9   :  { %v2413_v30 = vadd.f32 %v2412_v36, %v2273_v41  ;;  %v1589_v0 = vadd.f32 %v4048_v28, %v1588_v51  ;;  %v978_v44 = vpop.trf.xlu1  ;;  %v2212_v60 = vmax.f32 %v1594_v23, 0.0 }
 0x1fa   :  { %2852 = vmatmul.mubr.msk.f32.gmra.mxu0 %vm1117_vm15, %v978_v44  ;;  %v2877_v54 = vpop.f32.mrf.mxu1  ;;  %2933 = vmatmul.mubr.msk.f32.gmra.mxu1 %vm1117_vm15, %v4022_v52 }
 0x1fb   :  { %v4086_v53 = vpop.trf.xlu0  ;;  %v2211_v8 = vmax.f32 %v1589_v0, 0.0  ;;  %2935 = vmatprep.mubr.msk.f32.mxu1 %vm1117_vm15, %v4025_v38  ;;  %v2414_v16 = vadd.f32 %v2413_v30, %v2274_v22  ;;  %v1914_v21 = vadd.f32 %v2877_v54, %v4048_v28 }
 0x1fc   :  { %v1908_v14 = vpop.f32.mrf.mxu1 }
 0x1fd   :  { %v2338_v61 = vadd.f32 %v2337_v33, %v2211_v8  ;;  %v1909_v13 = vadd.f32 %v4048_v28, %v1908_v14  ;;  %v979_v47 = vpop.trf.xlu1  ;;  %v2276_v4 = vmax.f32 %v1914_v21, 0.0 }
 0x1fe   :  { %v2784_v43 = vpop.f32.mrf.mxu0  ;;  %2854 = vmatprep.mubr.msk.f32.mxu0 %vm1117_vm15, %v979_v47  ;;  %2936 = vmatmul.mubr.msk.f32.gmra.mxu1 %vm1117_vm15, %v4028_v19 }
 0x1ff   :  { %v1107_v58 = vpop.trf.xlu0  ;;  %v2275_v52 = vmax.f32 %v1909_v13, 0.0  ;;  %v1604_v42 = vadd.f32 %v2784_v43, %v4048_v28  ;;  %2938 = vmatprep.mubr.msk.f32.mxu1 %vm1117_vm15, %v4031_v39  ;;  %v2339_v38 = vadd.f32 %v2338_v61, %v2212_v60 }
 0x200   :  { %v1598_v34 = vpop.f32.mrf.mxu0 }
 0x201   :  { %v2415_v29 = vadd.f32 %v2414_v16, %v2275_v52  ;;  %v1599_v49 = vadd.f32 %v4048_v28, %v1598_v34  ;;  %v980_v24 = vpop.trf.xlu1  ;;  %v2214_v19 = vmax.f32 %v1604_v42, 0.0 }
 0x202   :  { %2855 = vmatmul.mubr.msk.f32.gmra.mxu0 %vm1117_vm15, %v980_v24  ;;  %v2880_v3 = vpop.f32.mrf.mxu1  ;;  %2939 = vmatmul.mubr.msk.f32.gmra.mxu1 %vm1117_vm15, %v4034_v55 }
 0x203   :  { %v1108_v6 = vpop.trf.xlu0  ;;  %v2213_v59 = vmax.f32 %v1599_v49, 0.0  ;;  %2941 = vmatprep.mubr.msk.f32.mxu1 %vm1117_vm15, %v4039_v17  ;;  %v2416_v39 = vadd.f32 %v2415_v29, %v2276_v4  ;;  %v1924_v7 = vadd.f32 %v2880_v3, %v4048_v28 }
 0x204   :  { %v1918_v25 = vpop.f32.mrf.mxu1 }
 0x205   :  { %v2340_v1 = vadd.f32 %v2339_v38, %v2213_v59  ;;  %v1919_v40 = vadd.f32 %v4048_v28, %v1918_v25  ;;  %v981_v32 = vpop.trf.xlu1  ;;  %v2278_v27 = vmax.f32 %v1924_v7, 0.0 }
 0x206   :  { %v2787_v12 = vpop.f32.mrf.mxu0  ;;  %2857 = vmatprep.mubr.msk.f32.mxu0 %vm1117_vm15, %v981_v32  ;;  %2942 = vmatmul.mubr.msk.f32.gmra.mxu1 %vm1117_vm15, %v4051_v20 }
 0x207   :  { %v1109_v63 = vpop.trf.xlu0  ;;  %v2277_v55 = vmax.f32 %v1919_v40, 0.0  ;;  %v1614_v45 = vadd.f32 %v2787_v12, %v4048_v28  ;;  %2944 = vmatprep.mubr.msk.f32.mxu1 %vm1117_vm15, %v4059_v46  ;;  %v2341_v17 = vadd.f32 %v2340_v1, %v2214_v19 }
 0x208   :  { %v1608_v57 = vpop.f32.mrf.mxu0 }
 0x209   :  { %v2417_v56 = vadd.f32 %v2416_v39, %v2277_v55  ;;  %v1609_v50 = vadd.f32 %v4048_v28, %v1608_v57  ;;  %v982_v5 = vpop.trf.xlu1  ;;  %v2216_v20 = vmax.f32 %v1614_v45, 0.0 }
 0x20a   :  { %2858 = vmatmul.mubr.msk.f32.gmra.mxu0 %vm1117_vm15, %v982_v5  ;;  %v2883_v2 = vpop.f32.mrf.mxu1  ;;  %2945 = vmatmul.mubr.msk.f32.gmra.mxu1 %vm1117_vm15, %v4068_v62 }
 0x20b   :  { %v1110_v36 = vpop.trf.xlu0  ;;  %v2215_v11 = vmax.f32 %v1609_v50, 0.0  ;;  %2947 = vmatprep.mubr.msk.f32.mxu1 %vm1117_vm15, %v4077_v26  ;;  %v2418_v46 = vadd.f32 %v2417_v56, %v2278_v27  ;;  %v1934_v37 = vadd.f32 %v2883_v2, %v4048_v28 }
 0x20c   :  { %v1928_v48 = vpop.f32.mrf.mxu1 }
 0x20d   :  { %v2342_v9 = vadd.f32 %v2341_v17, %v2215_v11  ;;  %v1929_v18 = vadd.f32 %v4048_v28, %v1928_v48  ;;  %v983_v31 = vpop.trf.xlu1  ;;  %v2280_v23 = vmax.f32 %v1934_v37, 0.0 }
 0x20e   :  { %v2790_v15 = vpop.f32.mrf.mxu0  ;;  %2860 = vmatprep.mubr.msk.f32.mxu0 %vm1117_vm15, %v983_v31  ;;  %2948 = vmatmul.mubr.msk.f32.gmra.mxu1 %vm1117_vm15, %v4086_v53 }
 0x20f   :  { %v1111_v35 = vpop.trf.xlu0  ;;  %v2279_v62 = vmax.f32 %v1929_v18, 0.0  ;;  %v1624_v10 = vadd.f32 %v2790_v15, %v4048_v28  ;;  %2950 = vmatprep.mubr.msk.f32.mxu1 %vm1117_vm15, %v1107_v58  ;;  %v2343_v26 = vadd.f32 %v2342_v9, %v2216_v20 }
 0x210   :  { %v1618_v41 = vpop.f32.mrf.mxu0 }
 0x211   :  { %v2419_v33 = vadd.f32 %v2418_v46, %v2279_v62  ;;  %v1619_v51 = vadd.f32 %v4048_v28, %v1618_v41  ;;  %v984_v30 = vpop.trf.xlu1  ;;  %v2218_v44 = vmax.f32 %v1624_v10, 0.0 }
 0x212   :  { %2861 = vmatmul.mubr.msk.f32.gmra.mxu0 %vm1117_vm15, %v984_v30  ;;  %v2886_v0 = vpop.f32.mrf.mxu1  ;;  %2951 = vmatmul.mubr.msk.f32.gmra.mxu1 %vm1117_vm15, %v1108_v6 }
 0x213   :  { %v1112_v22 = vpop.trf.xlu0  ;;  %v2217_v53 = vmax.f32 %v1619_v51, 0.0  ;;  %2953 = vmatprep.mubr.msk.f32.mxu1 %vm1117_vm15, %v1109_v63  ;;  %v2420_v54 = vadd.f32 %v2419_v33, %v2280_v23  ;;  %v1944_v16 = vadd.f32 %v2886_v0, %v4048_v28 }
 0x214   :  { %v1938_v60 = vpop.f32.mrf.mxu1 }
 0x215   :  { %v2344_v8 = vadd.f32 %v2343_v26, %v2217_v53  ;;  %v1939_v14 = vadd.f32 %v4048_v28, %v1938_v60  ;;  %v985_v21 = vpop.trf.xlu1  ;;  %v2282_v42 = vmax.f32 %v1944_v16, 0.0 }
 0x216   :  { %v2793_v13 = vpop.f32.mrf.mxu0  ;;  %2863 = vmatprep.mubr.msk.f32.mxu0 %vm1117_vm15, %v985_v21  ;;  %2954 = vmatmul.mubr.msk.f32.gmra.mxu1 %vm1117_vm15, %v1110_v36 }
 0x217   :  { %v1113_v61 = vpop.trf.xlu0  ;;  %v2281_v58 = vmax.f32 %v1939_v14, 0.0  ;;  %v1634_v47 = vadd.f32 %v2793_v13, %v4048_v28  ;;  %2956 = vmatprep.mubr.msk.f32.mxu1 %vm1117_vm15, %v1111_v35  ;;  %v2345_v43 = vadd.f32 %v2344_v8, %v2218_v44 }
 0x218   :  { %v1628_v52 = vpop.f32.mrf.mxu0 }
 0x219   :  { %v2421_v38 = vadd.f32 %v2420_v54, %v2281_v58  ;;  %v1629_v34 = vadd.f32 %v4048_v28, %v1628_v52  ;;  %v986_v29 = vpop.trf.xlu1  ;;  %v2220_v6 = vmax.f32 %v1634_v47, 0.0 }
 0x21a   :  { %2864 = vmatmul.mubr.msk.f32.gmra.mxu0 %vm1117_vm15, %v986_v29  ;;  %v2889_v49 = vpop.f32.mrf.mxu1  ;;  %2957 = vmatmul.mubr.msk.f32.gmra.mxu1 %vm1117_vm15, %v1112_v22 }
 0x21b   :  { %v1114_v4 = vpop.trf.xlu0  ;;  %v2219_v24 = vmax.f32 %v1629_v34, 0.0  ;;  %2959 = vmatprep.mubr.msk.f32.mxu1 %vm1117_vm15, %v1113_v61  ;;  %v2422_v3 = vadd.f32 %v2421_v38, %v2282_v42  ;;  %v1954_v39 = vadd.f32 %v2889_v49, %v4048_v28 }
 0x21c   :  { %v1948_v19 = vpop.f32.mrf.mxu1 }
 0x21d   :  { %v2346_v59 = vadd.f32 %v2345_v43, %v2219_v24  ;;  %v1949_v25 = vadd.f32 %v4048_v28, %v1948_v19  ;;  %v987_v7 = vpop.trf.xlu1  ;;  %v2284_v45 = vmax.f32 %v1954_v39, 0.0 }
 0x21e   :  { %v2796_v40 = vpop.f32.mrf.mxu0  ;;  %2866 = vmatprep.mubr.msk.f32.mxu0 %vm1117_vm15, %v987_v7  ;;  %2960 = vmatmul.mubr.msk.f32.gmra.mxu1 %vm1117_vm15, %v1114_v4 }
 0x21f   :  { %v1115_v1 = vpop.trf.xlu0  ;;  %v2283_v63 = vmax.f32 %v1949_v25, 0.0  ;;  %v1644_v32 = vadd.f32 %v2796_v40, %v4048_v28  ;;  %v2347_v12 = vadd.f32 %v2346_v59, %v2220_v6 }
 0x220   :  { %2962 = vmatprep.mubr.msk.f32.mxu1 %vm1117_vm15, %v1115_v1  ;;  %v1638_v55 = vpop.f32.mrf.mxu0 }
 0x221   :  { %v2423_v17 = vadd.f32 %v2422_v3, %v2283_v63  ;;  %v1639_v57 = vadd.f32 %v4048_v28, %v1638_v55  ;;  %v988_v56 = vpop.trf.xlu1  ;;  %v2222_v36 = vmax.f32 %v1644_v32, 0.0 }
 0x222   :  { %2867 = vmatmul.mubr.msk.f32.gmra.mxu0 %vm1117_vm15, %v988_v56  ;;  %v2892_v50 = vpop.f32.mrf.mxu1 }
 0x223   :  { %v1116_v27 = vpop.trf.xlu0  ;;  %v2221_v5 = vmax.f32 %v1639_v57, 0.0  ;;  %v2424_v2 = vadd.f32 %v2423_v17, %v2284_v45  ;;  %v1964_v46 = vadd.f32 %v2892_v50, %v4048_v28 }
 0x224   :  { %2963 = vmatmul.mubr.msk.f32.gmra.mxu1 %vm1117_vm15, %v1116_v27  ;;  %v1958_v20 = vpop.f32.mrf.mxu1 }
 0x225   :  { %v2348_v11 = vadd.f32 %v2347_v12, %v2221_v5  ;;  %v1959_v48 = vadd.f32 %v4048_v28, %v1958_v20  ;;  %v2286_v18 = vmax.f32 %v1964_v46, 0.0 }
 0x227   :  { %v2285_v9 = vmax.f32 %v1959_v48, 0.0  ;;  %v2349_v37 = vadd.f32 %v2348_v11, %v2222_v36 }
 0x229   :  { %v2425_v35 = vadd.f32 %v2424_v2, %v2285_v9 }
 0x22a   :  { %v2799_v31 = vpop.f32.mrf.mxu0 }
 0x22b   :  { %v4153_v15 = vadd.f32 %v2425_v35, %v2286_v18  ;;  %v1654_v10 = vadd.f32 %v2799_v31, %v4048_v28 }
 0x22c   :  { %v1648_v62 = vpop.f32.mrf.mxu0 }
 0x22d   :  { %v1649_v26 = vadd.f32 %v4048_v28, %v1648_v62  ;;  %v2224_v23 = vmax.f32 %v1654_v10, 0.0 }
 0x22f   :  { %v2223_v41 = vmax.f32 %v1649_v26, 0.0 }
 0x231   :  { %v2350_v33 = vadd.f32 %v2349_v37, %v2223_v41 }
 0x232   :  { %v2802_v51 = vpop.f32.mrf.mxu0 }
 0x233   :  { %v2351_v22 = vadd.f32 %v2350_v33, %v2224_v23  ;;  %v1664_v0 = vadd.f32 %v2802_v51, %v4048_v28 }
 0x234   :  { %v1658_v30 = vpop.f32.mrf.mxu0 }
 0x235   :  { %v1659_v44 = vadd.f32 %v4048_v28, %v1658_v30  ;;  %v2226_v54 = vmax.f32 %v1664_v0, 0.0 }
 0x237   :  { %v2225_v53 = vmax.f32 %v1659_v44, 0.0 }
 0x239   :  { %v2352_v60 = vadd.f32 %v2351_v22, %v2225_v53 }
 0x23a   :  { %v2805_v8 = vpop.f32.mrf.mxu0 }
 0x23b   :  { %v2353_v16 = vadd.f32 %v2352_v60, %v2226_v54  ;;  %v1674_v61 = vadd.f32 %v2805_v8, %v4048_v28 }
 0x23c   :  { %v1668_v14 = vpop.f32.mrf.mxu0 }
 0x23d   :  { %v1669_v21 = vadd.f32 %v4048_v28, %v1668_v14  ;;  %v2228_v58 = vmax.f32 %v1674_v61, 0.0 }
 0x23f   :  { %v2227_v13 = vmax.f32 %v1669_v21, 0.0 }
 0x241   :  { %v2354_v47 = vadd.f32 %v2353_v16, %v2227_v13 }
 0x242   :  { %v2808_v43 = vpop.f32.mrf.mxu0 }
 0x243   :  { %v2355_v52 = vadd.f32 %v2354_v47, %v2228_v58  ;;  %v1684_v38 = vadd.f32 %v2808_v43, %v4048_v28 }
 0x244   :  { %v1678_v42 = vpop.f32.mrf.mxu0 }
 0x245   :  { %v1679_v34 = vadd.f32 %v4048_v28, %v1678_v42  ;;  %v2230_v29 = vmax.f32 %v1684_v38, 0.0 }
 0x247   :  { %v2229_v4 = vmax.f32 %v1679_v34, 0.0 }
 0x249   :  { %v2356_v49 = vadd.f32 %v2355_v52, %v2229_v4 }
 0x24a   :  { %v2811_v6 = vpop.f32.mrf.mxu0 }
 0x24b   :  { %v2357_v24 = vadd.f32 %v2356_v49, %v2230_v29  ;;  %v1694_v19 = vadd.f32 %v2811_v6, %v4048_v28 }
 0x24c   :  { %v1688_v3 = vpop.f32.mrf.mxu0 }
 0x24d   :  { %v1689_v59 = vadd.f32 %v4048_v28, %v1688_v3  ;;  %v2232_v25 = vmax.f32 %v1694_v19, 0.0 }
 0x24f   :  { %v2231_v39 = vmax.f32 %v1689_v59, 0.0 }
 0x251   :  { %v2358_v1 = vadd.f32 %v2357_v24, %v2231_v39 }
 0x252   :  { %v2814_v7 = vpop.f32.mrf.mxu0 }
 0x253   :  { %v2359_v40 = vadd.f32 %v2358_v1, %v2232_v25  ;;  %v1704_v32 = vadd.f32 %v2814_v7, %v4048_v28 }
 0x254   :  { %v1698_v63 = vpop.f32.mrf.mxu0 }
 0x255   :  { %v1699_v12 = vadd.f32 %v4048_v28, %v1698_v63  ;;  %v2234_v45 = vmax.f32 %v1704_v32, 0.0 }
 0x257   :  { %v2233_v55 = vmax.f32 %v1699_v12, 0.0 }
 0x259   :  { %v2360_v17 = vadd.f32 %v2359_v40, %v2233_v55 }
 0x25a   :  { %v2817_v57 = vpop.f32.mrf.mxu0 }
 0x25b   :  { %v2361_v27 = vadd.f32 %v2360_v17, %v2234_v45  ;;  %v1714_v50 = vadd.f32 %v2817_v57, %v4048_v28 }
 0x25c   :  { %v1708_v56 = vpop.f32.mrf.mxu0 }
 0x25d   :  { %v1709_v36 = vadd.f32 %v4048_v28, %v1708_v56  ;;  %v2236_v2 = vmax.f32 %v1714_v50, 0.0 }
 0x25f   :  { %v2235_v5 = vmax.f32 %v1709_v36, 0.0 }
 0x261   :  { %v2362_v20 = vadd.f32 %v2361_v27, %v2235_v5 }
 0x262   :  { %v2820_v11 = vpop.f32.mrf.mxu0 }
 0x263   :  { %v2363_v46 = vadd.f32 %v2362_v20, %v2236_v2  ;;  %v1724_v9 = vadd.f32 %v2820_v11, %v4048_v28 }
 0x264   :  { %v1718_v48 = vpop.f32.mrf.mxu0 }
 0x265   :  { %v1719_v37 = vadd.f32 %v4048_v28, %v1718_v48  ;;  %v2238_v35 = vmax.f32 %v1724_v9, 0.0 }
 0x266   :  { %v2823_v51 = vpop.f32.mrf.mxu0 }
 0x267   :  { %v2237_v18 = vmax.f32 %v1719_v37, 0.0  ;;  %v1734_v34 = vadd.f32 %v2823_v51, %v4048_v28 }
 0x268   :  { %v1728_v54 = vpop.f32.mrf.mxu0 }
 0x269   :  { %v2364_v31 = vadd.f32 %v2363_v46, %v2237_v18  ;;  %v1729_v42 = vadd.f32 %v4048_v28, %v1728_v54  ;;  %v2240_v39 = vmax.f32 %v1734_v34, 0.0 }
 0x26a   :  { %v2895_v62 = vpop.f32.mrf.mxu1  ;;  %v2826_v14 = vpop.f32.mrf.mxu0 }
 0x26b   :  { %v4171_v10 = vadd.f32 %v2364_v31, %v2238_v35  ;;  %v1974_v41 = vadd.f32 %v2895_v62, %v4048_v28  ;;  %v2239_v3 = vmax.f32 %v1729_v42, 0.0  ;;  %v1744_v32 = vadd.f32 %v2826_v14, %v4048_v28 }
 0x26c   :  { %v1968_v26 = vpop.f32.mrf.mxu1  ;;  %v1738_v43 = vpop.f32.mrf.mxu0 }
 0x26d   :  { %v1969_v23 = vadd.f32 %v4048_v28, %v1968_v26  ;;  %v2288_v22 = vmax.f32 %v1974_v41, 0.0  ;;  %v1739_v4 = vadd.f32 %v4048_v28, %v1738_v43  ;;  %v2374_v63 = vadd.f32 %v2240_v39, %v2239_v3 }
 0x26e   :  { %v2829_v29 = vpop.f32.mrf.mxu0  ;;  %v2242_v50 = vmax.f32 %v1744_v32, 0.0 }
 0x26f   :  { %v2287_v33 = vmax.f32 %v1969_v23, 0.0  ;;  %v2241_v25 = vmax.f32 %v1739_v4, 0.0  ;;  %v1754_v9 = vadd.f32 %v2829_v29, %v4048_v28 }
 0x270   :  { %v1748_v1 = vpop.f32.mrf.mxu0 }
 0x271   :  { %v2427_v30 = vadd.f32 %v4153_v15, %v2287_v33  ;;  %v2375_v55 = vadd.f32 %v2374_v63, %v2241_v25  ;;  %v1749_v45 = vadd.f32 %v4048_v28, %v1748_v1  ;;  %v2244_v23 = vmax.f32 %v1754_v9, 0.0 }
 0x272   :  { %v2898_v0 = vpop.f32.mrf.mxu1  ;;  %v2832_v17 = vpop.f32.mrf.mxu0 }
 0x273   :  { %v2428_v53 = vadd.f32 %v2427_v30, %v2288_v22  ;;  %v1984_v60 = vadd.f32 %v2898_v0, %v4048_v28  ;;  %v2243_v2 = vmax.f32 %v1749_v45, 0.0  ;;  %v2376_v20 = vadd.f32 %v2375_v55, %v2242_v50 }
 0x274   :  { %v1978_v44 = vpop.f32.mrf.mxu1  ;;  %v1758_v11 = vpop.f32.mrf.mxu0  ;;  %v1764_v54 = vadd.f32 %v2832_v17, %v4048_v28 }
 0x275   :  { %v1979_v8 = vadd.f32 %v4048_v28, %v1978_v44  ;;  %v2290_v61 = vmax.f32 %v1984_v60, 0.0  ;;  %v2377_v18 = vadd.f32 %v2376_v20, %v2243_v2  ;;  %v1759_v35 = vadd.f32 %v4048_v28, %v1758_v11 }
 0x276   :  { %v2835_v31 = vpop.f32.mrf.mxu0 }
 0x277   :  { %v2289_v16 = vmax.f32 %v1979_v8, 0.0  ;;  %v2245_v22 = vmax.f32 %v1759_v35, 0.0  ;;  %v2378_v30 = vadd.f32 %v2377_v18, %v2244_v23  ;;  %v1774_v4 = vadd.f32 %v2835_v31, %v4048_v28 }
 0x278   :  { %v1768_v0 = vpop.f32.mrf.mxu0 }
 0x279   :  { %v2429_v21 = vadd.f32 %v2428_v53, %v2289_v16  ;;  %v2379_v8 = vadd.f32 %v2378_v30, %v2245_v22  ;;  %v1769_v16 = vadd.f32 %v4048_v28, %v1768_v0  ;;  %v2248_v39 = vmax.f32 %v1774_v4, 0.0 }
 0x27a   :  { %v2901_v13 = vpop.f32.mrf.mxu1  ;;  %v2838_v14 = vpop.f32.mrf.mxu0 }
 0x27b   :  { %v2430_v47 = vadd.f32 %v2429_v21, %v2290_v61  ;;  %v1994_v52 = vadd.f32 %v2901_v13, %v4048_v28  ;;  %v1784_v45 = vadd.f32 %v2838_v14, %v4048_v28 }
 0x27c   :  { %v1988_v58 = vpop.f32.mrf.mxu1  ;;  %v1778_v42 = vpop.f32.mrf.mxu0 }
 0x27d   :  { %v1989_v15 = vadd.f32 %v4048_v28, %v1988_v58  ;;  %v2292_v49 = vmax.f32 %v1994_v52, 0.0  ;;  %v2246_v58 = vmax.f32 %v1764_v54, 0.0  ;;  %v2247_v52 = vmax.f32 %v1769_v16, 0.0 }
 0x27f   :  { %v2291_v38 = vmax.f32 %v1989_v15, 0.0  ;;  %v2380_v15 = vadd.f32 %v2379_v8, %v2246_v58 }
 0x281   :  { %v2431_v6 = vadd.f32 %v2430_v47, %v2291_v38 }
 0x282   :  { %v2904_v24 = vpop.f32.mrf.mxu1 }
 0x283   :  { %v2432_v19 = vadd.f32 %v2431_v6, %v2292_v49  ;;  %v2004_v7 = vadd.f32 %v2904_v24, %v4048_v28  ;;  %v2381_v49 = vadd.f32 %v2380_v15, %v2247_v52  ;;  %v1779_v6 = vadd.f32 %v4048_v28, %v1778_v42  ;;  %v2841_v24 = vpop.f32.mrf.mxu0 }
 0x284   :  { %v1998_v59 = vpop.f32.mrf.mxu1 }
 0x285   :  { %v1999_v40 = vadd.f32 %v4048_v28, %v1998_v59  ;;  %v2294_v57 = vmax.f32 %v2004_v7, 0.0  ;;  %v2249_v7 = vmax.f32 %v1779_v6, 0.0  ;;  %v1788_v63 = vpop.f32.mrf.mxu0 }
 0x287   :  { %v2293_v12 = vmax.f32 %v1999_v40, 0.0  ;;  %v2382_v40 = vadd.f32 %v2381_v49, %v2248_v39  ;;  %v2844_v2 = vpop.f32.mrf.mxu0 }
 0x288   :  { %v1804_v49 = vadd.f32 %v2844_v2, %v4048_v28 }
 0x289   :  { %v2433_v27 = vadd.f32 %v2432_v19, %v2293_v12  ;;  %v1798_v31 = vpop.f32.mrf.mxu0 }
 0x28a   :  { %v2907_v56 = vpop.f32.mrf.mxu1 }
 0x28b   :  { %v2434_v36 = vadd.f32 %v2433_v27, %v2294_v57  ;;  %v2014_v46 = vadd.f32 %v2907_v56, %v4048_v28  ;;  %v1789_v57 = vadd.f32 %v4048_v28, %v1788_v63  ;;  %v2383_v56 = vadd.f32 %v2382_v40, %v2249_v7 }
 0x28c   :  { %v2008_v5 = vpop.f32.mrf.mxu1 }
 0x28d   :  { %v2009_v48 = vadd.f32 %v4048_v28, %v2008_v5  ;;  %v2296_v62 = vmax.f32 %v2014_v46, 0.0  ;;  %v2250_v46 = vmax.f32 %v1784_v45, 0.0  ;;  %v2251_v18 = vmax.f32 %v1789_v57, 0.0 }
 0x28f   :  { %v2295_v37 = vmax.f32 %v2009_v48, 0.0  ;;  %v2384_v35 = vadd.f32 %v2383_v56, %v2250_v46 }
 0x291   :  { %v2435_v26 = vadd.f32 %v2434_v36, %v2295_v37 }
 0x292   :  { %v2910_v41 = vpop.f32.mrf.mxu1 }
 0x293   :  { %v2436_v33 = vadd.f32 %v2435_v26, %v2296_v62  ;;  %v2024_v44 = vadd.f32 %v2910_v41, %v4048_v28 }
 0x294   :  { %v2018_v51 = vpop.f32.mrf.mxu1 }
 0x295   :  { %v2019_v53 = vadd.f32 %v4048_v28, %v2018_v51  ;;  %v2298_v61 = vmax.f32 %v2024_v44, 0.0  ;;  %v2385_v44 = vadd.f32 %v2384_v35, %v2251_v18 }
 0x297   :  { %v2297_v60 = vmax.f32 %v2019_v53, 0.0  ;;  %v1799_v53 = vadd.f32 %v4048_v28, %v1798_v31 }
 0x299   :  { %v2437_v21 = vadd.f32 %v2436_v33, %v2297_v60  ;;  %v1794_v33 = vadd.f32 %v2841_v24, %v4048_v28 }
 0x29a   :  { %v2913_v13 = vpop.f32.mrf.mxu1 }
 0x29b   :  { %v2438_v47 = vadd.f32 %v2437_v21, %v2298_v61  ;;  %v2034_v38 = vadd.f32 %v2913_v13, %v4048_v28  ;;  %v2252_v61 = vmax.f32 %v1794_v33, 0.0 }
 0x29c   :  { %v2028_v43 = vpop.f32.mrf.mxu1 }
 0x29d   :  { %v2029_v34 = vadd.f32 %v4048_v28, %v2028_v43  ;;  %v2300_v3 = vmax.f32 %v2034_v38, 0.0  ;;  %v2253_v43 = vmax.f32 %v1799_v53, 0.0  ;;  %v2386_v52 = vadd.f32 %v2385_v44, %v2252_v61 }
 0x29f   :  { %v2299_v29 = vmax.f32 %v2029_v34, 0.0 }
 0x2a1   :  { %v2439_v19 = vadd.f32 %v2438_v47, %v2299_v29 }
 0x2a2   :  { %v2916_v59 = vpop.f32.mrf.mxu1 }
 0x2a3   :  { %v2440_v25 = vadd.f32 %v2439_v19, %v2300_v3  ;;  %v2044_v32 = vadd.f32 %v2916_v59, %v4048_v28  ;;  %v2387_v59 = vadd.f32 %v2386_v52, %v2253_v43 }
 0x2a4   :  { %v2038_v1 = vpop.f32.mrf.mxu1 }
 0x2a5   :  { %v2039_v12 = vadd.f32 %v4048_v28, %v2038_v1  ;;  %v2302_v50 = vmax.f32 %v2044_v32, 0.0  ;;  %v2254_v32 = vmax.f32 %v1804_v49, 0.0 }
 0x2a6   :  { %v2919_v55 = vpop.f32.mrf.mxu1 }
 0x2a7   :  { %v2301_v17 = vmax.f32 %v2039_v12, 0.0  ;;  %v2054_v20 = vadd.f32 %v2919_v55, %v4048_v28  ;;  %v2388_v56 = vadd.f32 %v2387_v59, %v2254_v32 }
 0x2a8   :  { %v2048_v27 = vpop.f32.mrf.mxu1 }
 0x2a9   :  { %v2441_v36 = vadd.f32 %v2440_v25, %v2301_v17  ;;  %v2049_v5 = vadd.f32 %v4048_v28, %v2048_v27  ;;  %v2304_v62 = vmax.f32 %v2054_v20, 0.0 }
 0x2aa   :  { %v2922_v11 = vpop.f32.mrf.mxu1  ;;  %v2847_v22 = vpop.f32.mrf.mxu0 }
 0x2ab   :  { %v4205_v48 = vadd.f32 %v2441_v36, %v2302_v50  ;;  %v2303_v9 = vmax.f32 %v2049_v5, 0.0  ;;  %v2064_v26 = vadd.f32 %v2922_v11, %v4048_v28  ;;  %v1814_v27 = vadd.f32 %v2847_v22, %v4048_v28 }
 0x2ac   :  { %v2058_v37 = vpop.f32.mrf.mxu1  ;;  %v1808_v13 = vpop.f32.mrf.mxu0 }
 0x2ad   :  { %v2059_v41 = vadd.f32 %v4048_v28, %v2058_v37  ;;  %v2450_v51 = vadd.f32 %v2304_v62, %v2303_v9  ;;  %v2306_v60 = vmax.f32 %v2064_v26, 0.0  ;;  %v1809_v6 = vadd.f32 %v4048_v28, %v1808_v13 }
 0x2ae   :  { %v2925_v23 = vpop.f32.mrf.mxu1  ;;  %v2256_v31 = vmax.f32 %v1814_v27, 0.0 }
 0x2af   :  { %v2305_v30 = vmax.f32 %v2059_v41, 0.0  ;;  %v2074_v16 = vadd.f32 %v2925_v23, %v4048_v28  ;;  %v2255_v12 = vmax.f32 %v1809_v6, 0.0 }
 0x2b0   :  { %v2068_v0 = vpop.f32.mrf.mxu1 }
 0x2b1   :  { %v2069_v54 = vadd.f32 %v4048_v28, %v2068_v0  ;;  %v2451_v8 = vadd.f32 %v2450_v51, %v2305_v30  ;;  %v2308_v15 = vmax.f32 %v2074_v16, 0.0  ;;  %v2389_v46 = vadd.f32 %v2388_v56, %v2255_v12 }
 0x2b2   :  { %v2928_v14 = vpop.f32.mrf.mxu1  ;;  %v2850_v38 = vpop.f32.mrf.mxu0 }
 0x2b3   :  { %v2307_v21 = vmax.f32 %v2069_v54, 0.0  ;;  %v2452_v58 = vadd.f32 %v2451_v8, %v2306_v60  ;;  %v2084_v34 = vadd.f32 %v2928_v14, %v4048_v28  ;;  %v1824_v30 = vadd.f32 %v2850_v38, %v4048_v28 }
 0x2b4   :  { %v2078_v47 = vpop.f32.mrf.mxu1  ;;  %v1818_v1 = vpop.f32.mrf.mxu0  ;;  %v2390_v0 = vadd.f32 %v2389_v46, %v2256_v31 }
 0x2b5   :  { %v2453_v42 = vadd.f32 %v2452_v58, %v2307_v21  ;;  %v2079_v4 = vadd.f32 %v4048_v28, %v2078_v47  ;;  %v2310_v25 = vmax.f32 %v2084_v34, 0.0  ;;  %v1819_v50 = vadd.f32 %v4048_v28, %v1818_v1 }
 0x2b6   :  { %v2931_v29 = vpop.f32.mrf.mxu1  ;;  %v2258_v47 = vmax.f32 %v1824_v30, 0.0 }
 0x2b7   :  { %v2309_v24 = vmax.f32 %v2079_v4, 0.0  ;;  %v2454_v3 = vadd.f32 %v2453_v42, %v2308_v15  ;;  %v2094_v40 = vadd.f32 %v2931_v29, %v4048_v28  ;;  %v2257_v62 = vmax.f32 %v1819_v50, 0.0 }
 0x2b8   :  { %v2088_v19 = vpop.f32.mrf.mxu1 }
 0x2b9   :  { %v2089_v39 = vadd.f32 %v4048_v28, %v2088_v19  ;;  %v2455_v7 = vadd.f32 %v2454_v3, %v2309_v24  ;;  %v2312_v5 = vmax.f32 %v2094_v40, 0.0  ;;  %v2391_v8 = vadd.f32 %v2390_v0, %v2257_v62 }
 0x2ba   :  { %v2934_v63 = vpop.f32.mrf.mxu1  ;;  %v2853_v17 = vpop.f32.mrf.mxu0 }
 0x2bb   :  { %v2311_v55 = vmax.f32 %v2089_v39, 0.0  ;;  %v2456_v45 = vadd.f32 %v2455_v7, %v2310_v25  ;;  %v2104_v20 = vadd.f32 %v2934_v63, %v4048_v28  ;;  %v1834_v38 = vadd.f32 %v2853_v17, %v4048_v28 }
 0x2bc   :  { %v2098_v57 = vpop.f32.mrf.mxu1  ;;  %v1828_v37 = vpop.f32.mrf.mxu0  ;;  %v2392_v34 = vadd.f32 %v2391_v8, %v2258_v47 }
 0x2bd   :  { %v2099_v36 = vadd.f32 %v4048_v28, %v2098_v57  ;;  %v2457_v2 = vadd.f32 %v2456_v45, %v2311_v55  ;;  %v2314_v41 = vmax.f32 %v2104_v20, 0.0  ;;  %v1829_v44 = vadd.f32 %v4048_v28, %v1828_v37 }
 0x2be   :  { %v2937_v11 = vpop.f32.mrf.mxu1  ;;  %v2260_v40 = vmax.f32 %v1834_v38, 0.0 }
 0x2bf   :  { %v2313_v9 = vmax.f32 %v2099_v36, 0.0  ;;  %v2458_v18 = vadd.f32 %v2457_v2, %v2312_v5  ;;  %v2114_v33 = vadd.f32 %v2937_v11, %v4048_v28  ;;  %v2259_v43 = vmax.f32 %v1829_v44, 0.0 }
 0x2c0   :  { %v2108_v35 = vpop.f32.mrf.mxu1 }
 0x2c1   :  { %v2109_v26 = vadd.f32 %v4048_v28, %v2108_v35  ;;  %v2459_v23 = vadd.f32 %v2458_v18, %v2313_v9  ;;  %v2316_v14 = vmax.f32 %v2114_v33, 0.0  ;;  %v2393_v59 = vadd.f32 %v2392_v34, %v2259_v43  ;;  %v2986_v33 = vld [vmem:[%s4255_s3] ss:$0 sm:$0xff] }
 0x2c2   :  { %v2856_v51 = vpop.f32.mrf.mxu0  ;;  %v2940_v22 = vpop.f32.mrf.mxu1 }
 0x2c3   :  { %v2315_v53 = vmax.f32 %v2109_v26, 0.0  ;;  %v2460_v54 = vadd.f32 %v2459_v23, %v2314_v41  ;;  %v2124_v21 = vadd.f32 %v2940_v22, %v4048_v28  ;;  %v1844_v57 = vadd.f32 %v2856_v51, %v4048_v28 }
 0x2c4   :  { %v2118_v60 = vpop.f32.mrf.mxu1  ;;  %v1838_v13 = vpop.f32.mrf.mxu0  ;;  %v2394_v27 = vadd.f32 %v2393_v59, %v2260_v40 }
 0x2c5   :  { %v2119_v16 = vadd.f32 %v4048_v28, %v2118_v60  ;;  %v2461_v61 = vadd.f32 %v2460_v54, %v2315_v53  ;;  %v1839_v4 = vadd.f32 %v4048_v28, %v1838_v13  ;;  %v2318_v49 = vmax.f32 %v2124_v21, 0.0 }
 0x2c6   :  { %v2943_v58 = vpop.f32.mrf.mxu1  ;;  %v2262_v35 = vmax.f32 %v1844_v57, 0.0  ;;  %v2443_v57 = vrot.slane %v4205_v48, 4 }
 0x2c7   :  { %v2317_v52 = vmax.f32 %v2119_v16, 0.0  ;;  %v2462_v15 = vadd.f32 %v2461_v61, %v2316_v14  ;;  %v2134_v24 = vadd.f32 %v2943_v58, %v4048_v28  ;;  %v2261_v63 = vmax.f32 %v1839_v4, 0.0 }
 0x2c8   :  { %v2128_v42 = vpop.f32.mrf.mxu1 }
 0x2c9   :  { %v2129_v29 = vadd.f32 %v4048_v28, %v2128_v42  ;;  %v2463_v6 = vadd.f32 %v2462_v15, %v2317_v52  ;;  %v2320_v12 = vmax.f32 %v2134_v24, 0.0  ;;  %v2395_v2 = vadd.f32 %v2394_v27, %v2261_v63 }
 0x2ca   :  { %v2859_v3 = vpop.f32.mrf.mxu0  ;;  %v2946_v19 = vpop.f32.mrf.mxu1  ;;  %v2366_v63 = vrot.slane %v4171_v10, 4 }
 0x2cb   :  { %v2319_v39 = vmax.f32 %v2129_v29, 0.0  ;;  %v2464_v25 = vadd.f32 %v2463_v6, %v2318_v49  ;;  %v2144_v45 = vadd.f32 %v2946_v19, %v4048_v28  ;;  %v1854_v51 = vadd.f32 %v2986_v33, %v2859_v3 }
 0x2cc   :  { %v1848_v1 = vpop.f32.mrf.mxu0  ;;  %v2138_v7 = vpop.f32.mrf.mxu1  ;;  %v2396_v22 = vadd.f32 %v2395_v2, %v2262_v35 }
 0x2cd   :  { %v2139_v32 = vadd.f32 %v4048_v28, %v2138_v7  ;;  %v2465_v55 = vadd.f32 %v2464_v25, %v2319_v39  ;;  %v1849_v56 = vadd.f32 %v4048_v28, %v1848_v1  ;;  %v2322_v11 = vmax.f32 %v2144_v45, 0.0 }
 0x2ce   :  { %v2949_v17 = vpop.f32.mrf.mxu1  ;;  %v2264_v61 = vmax.f32 %v1854_v51, 0.0 }
 0x2cf   :  { %v2321_v50 = vmax.f32 %v2139_v32, 0.0  ;;  %v2466_v36 = vadd.f32 %v2465_v55, %v2320_v12  ;;  %v2154_v9 = vadd.f32 %v2949_v17, %v4048_v28  ;;  %v2263_v31 = vmax.f32 %v1849_v56, 0.0 }
 0x2d0   :  { %v2148_v5 = vpop.f32.mrf.mxu1 }
 0x2d1   :  { %v2149_v20 = vadd.f32 %v4048_v28, %v2148_v5  ;;  %v2467_v46 = vadd.f32 %v2466_v36, %v2321_v50  ;;  %v2324_v44 = vmax.f32 %v2154_v9, 0.0  ;;  %v2397_v60 = vadd.f32 %v2396_v22, %v2263_v31 }
 0x2d2   :  { %v2862_v37 = vpop.f32.mrf.mxu0  ;;  %v2952_v18 = vpop.f32.mrf.mxu1 }
 0x2d3   :  { %v2323_v62 = vmax.f32 %v2149_v20, 0.0  ;;  %v2468_v26 = vadd.f32 %v2467_v46, %v2322_v11  ;;  %v2164_v54 = vadd.f32 %v2986_v33, %v2952_v18  ;;  %v1864_v42 = vadd.f32 %v2986_v33, %v2862_v37 }
 0x2d4   :  { %v1858_v41 = vpop.f32.mrf.mxu0  ;;  %v2158_v23 = vpop.f32.mrf.mxu1  ;;  %v2398_v38 = vadd.f32 %v2397_v60, %v2264_v61  ;;  %v2367_v11 = vadd.f32 %v2366_v63, %v4171_v10 }
 0x2d5   :  { %v1859_v30 = vadd.f32 %v2986_v33, %v1858_v41  ;;  %v2159_v0 = vadd.f32 %v2986_v33, %v2158_v23  ;;  %v2469_v53 = vadd.f32 %v2468_v26, %v2323_v62  ;;  %v2326_v58 = vmax.f32 %v2164_v54, 0.0 }
 0x2d6   :  { %v2955_v28 = vpop.f32.mrf.mxu1  ;;  %v2266_v1 = vmax.f32 %v1864_v42, 0.0  ;;  %v2444_v26 = vadd.f32 %v2443_v57, %v4205_v48 }
 0x2d7   :  { %v2325_v8 = vmax.f32 %v2159_v0, 0.0  ;;  %v2470_v16 = vadd.f32 %v2469_v53, %v2324_v44  ;;  %v2265_v21 = vmax.f32 %v1859_v30, 0.0  ;;  %v2174_v43 = vadd.f32 %v2986_v33, %v2955_v28 }
 0x2d8   :  { %v2168_v14 = vpop.f32.mrf.mxu1  ;;  %v2368_v53 = vrot.slane %v2367_v11, 2  ;;  %v2445_v10 = vrot.slane %v2444_v26, 2 }
 0x2d9   :  { %v2169_v13 = vadd.f32 %v2986_v33, %v2168_v14  ;;  %v2471_v47 = vadd.f32 %v2470_v16, %v2325_v8  ;;  %v2399_v6 = vadd.f32 %v2398_v38, %v2265_v21  ;;  %v2328_v19 = vmax.f32 %v2174_v43, 0.0 }
 0x2da   :  { %v2865_v52 = vpop.f32.mrf.mxu0  ;;  %v2958_v15 = vpop.f32.mrf.mxu1  ;;  %v2369_v61 = vadd.f32 %v2368_v53, %v2367_v11 }
 0x2db   :  { %v2327_v34 = vmax.f32 %v2169_v13, 0.0  ;;  %v2472_v4 = vadd.f32 %v2471_v47, %v2326_v58  ;;  %v2184_v39 = vadd.f32 %v2986_v33, %v2958_v15  ;;  %v1874_v55 = vadd.f32 %v2986_v33, %v2865_v52 }
 0x2dc   :  { %v1868_v29 = vpop.f32.mrf.mxu0  ;;  %v2178_v49 = vpop.f32.mrf.mxu1  ;;  %v2400_v45 = vadd.f32 %v2399_v6, %v2266_v1  ;;  %v2446_v13 = vadd.f32 %v2445_v10, %v2444_v26  ;;  %v2370_v43 = vrot.slane %v2369_v61, 1 }
 0x2dd   :  { %v1869_v24 = vadd.f32 %v2986_v33, %v1868_v29  ;;  %v2179_v3 = vadd.f32 %v2986_v33, %v2178_v49  ;;  %v2473_v59 = vadd.f32 %v2472_v4, %v2327_v34  ;;  %v2330_v27 = vmax.f32 %v2184_v39, 0.0 }
 0x2de   :  { %v2961_v25 = vpop.f32.mrf.mxu1  ;;  %v2268_v18 = vmax.f32 %v1874_v55, 0.0  ;;  %v2447_v52 = vrot.slane %v2446_v13, 1  ;;  %v2371_v34 = vadd.f32 %v2370_v43, %v2369_v61 }
 0x2df   :  { %v2267_v7 = vmax.f32 %v1869_v24, 0.0  ;;  %v2329_v40 = vmax.f32 %v2179_v3, 0.0  ;;  %v2474_v32 = vadd.f32 %v2473_v59, %v2328_v19  ;;  %v2194_v50 = vadd.f32 %v2986_v33, %v2961_v25 }
 0x2e0   :  { %v2188_v12 = vpop.f32.mrf.mxu1  ;;  %v2448_v29 = vadd.f32 %v2447_v52, %v2446_v13  ;;  %v2373_v3 = vmul.f32 0.00390625, %v2371_v34 }
 0x2e1   :  { %v2189_v17 = vadd.f32 %v2986_v33, %v2188_v12  ;;  %v2475_v56 = vadd.f32 %v2474_v32, %v2329_v40  ;;  %v2401_v2 = vadd.f32 %v2400_v45, %v2267_v7  ;;  %v2332_v41 = vmax.f32 %v2194_v50, 0.0 }
 0x2e2   :  { %v2868_v36 = vpop.f32.mrf.mxu0  ;;  %v2449_v59 = vmul.f32 0.00390625, %v2448_v29 }
 0x2e3   :  { %v2331_v20 = vmax.f32 %v2189_v17, 0.0  ;;  %v2476_v46 = vadd.f32 %v2475_v56, %v2330_v27  ;;  %v1884_v35 = vadd.f32 %v2986_v33, %v2868_v36  ;;  %v2402_v30 = vadd.f32 %v2401_v2, %v2268_v18 }
 0x2e4   :  { %v2964_v5 = vpop.f32.mrf.mxu1  ;;  %v1878_v9 = vpop.f32.mrf.mxu0 }
 0x2e5   :  { %v1879_v31 = vadd.f32 %v2986_v33, %v1878_v9  ;;  %v2477_v23 = vadd.f32 %v2476_v46, %v2331_v20  ;;  %v2204_v51 = vadd.f32 %v2986_v33, %v2964_v5  ;;  %v2270_v54 = vmax.f32 %v1884_v35, 0.0 }
 0x2e6   :  { %v2198_v37 = vpop.f32.mrf.mxu1 }
 0x2e7   :  { %v2199_v62 = vadd.f32 %v2986_v33, %v2198_v37  ;;  %v2269_v22 = vmax.f32 %v1879_v31, 0.0  ;;  %v2478_v44 = vadd.f32 %v2477_v23, %v2332_v41  ;;  %v2334_v60 = vmax.f32 %v2204_v51, 0.0 }
 0x2e9   :  { %v2333_v0 = vmax.f32 %v2199_v62, 0.0  ;;  %v2403_v28 = vadd.f32 %v2402_v30, %v2269_v22 }
 0x2eb   :  { %v2479_v8 = vadd.f32 %v2478_v44, %v2333_v0  ;;  %v2404_v16 = vadd.f32 %v2403_v28, %v2270_v54 }
 0x2ed   :  { %v2480_v14 = vadd.f32 %v2479_v8, %v2334_v60  ;;  %v2405_v21 = vrot.slane %v2404_v16, 4 }
 0x2ef   :  { %v2481_v58 = vrot.slane %v2480_v14, 4  ;;  %v2406_v48 = vadd.f32 %v2405_v21, %v2404_v16 }
 0x2f1   :  { %v2482_v47 = vadd.f32 %v2481_v58, %v2480_v14  ;;  %v2407_v33 = vrot.slane %v2406_v48, 2 }
 0x2f3   :  { %v2483_v15 = vrot.slane %v2482_v47, 2  ;;  %v2408_v42 = vadd.f32 %v2407_v33, %v2406_v48 }
 0x2f5   :  { %v2484_v38 = vadd.f32 %v2483_v15, %v2482_v47  ;;  %v2409_v4 = vrot.slane %v2408_v42, 1 }
 0x2f7   :  { %v2485_v49 = vrot.slane %v2484_v38, 1  ;;  %v2410_v6 = vadd.f32 %v2409_v4, %v2408_v42 }
 0x2f9   :  { %v2486_v24 = vadd.f32 %v2485_v49, %v2484_v38  ;;  %v2411_v19 = vmul.f32 0.00390625, %v2410_v6 }
 0x2fb   :  { %v2488_v39 = vsel %vm797_vm7, %v2373_v3, %v2411_v19  ;;  %v2487_v25 = vmul.f32 0.00390625, %v2486_v24 }
 0x2fc   :  { %v2489_v1 = vsel %vm824_vm12, %v2488_v39, %v2449_v59 }
 0x2fd   :  { %v2490_v7 = vsel %vm779_vm5, %v2489_v1, %v2487_v25 }
 0x2fe   :  { %2491 = vst [vmem:[%s4256_s4] sm:$0xf] %v2490_v7 }

</bundles_post_ra>
